<compile_context>
chip_gen: v6e
topology: v6e:2x2x1
jax: 0.10.0
libtpu: 0.0.40
codegen_flags: <defaults>
</compile_context>

<pallas_src>
import jax
import jax.numpy as jnp
from jax import lax
from jax.experimental import pallas as pl
from jax.experimental.pallas import tpu as pltpu


def _round_up(x, m):
    return (x + m - 1) // m * m


def _make_recurrent_kernel(hidden_pad, tile_t):
    Hp = hidden_pad

    def kernel(gx_ref, whh_ref, h_out_ref, h_scr, c_scr):
        # gx_ref:    (TILE_T, B, 4*Hp)  precomputed x @ W_ih^T + bias (time-major)
        # whh_ref:   (Hp, 4*Hp)         W_hh^T, gate-grouped & lane-padded
        # h_out_ref: (TILE_T, B, Hp)    hidden states (lane-dense output)
        @pl.when(pl.program_id(0) == 0)
        def _():
            h_scr[...] = jnp.zeros_like(h_scr)
            c_scr[...] = jnp.zeros_like(c_scr)

        whh = whh_ref[...]  # hoisted load, reused by every unrolled step

        def step(lt, carry):
            h, c = carry
            # Only the recurrent matmul remains on the serial critical path.
            gates = gx_ref[lt] + jnp.dot(h, whh,
                                         preferred_element_type=jnp.float32)
            # Lane-aligned gate slices (each a multiple of 128 lanes).
            i_g = jax.nn.sigmoid(gates[:, 0 * Hp:1 * Hp])
            f_g = jax.nn.sigmoid(gates[:, 1 * Hp:2 * Hp])
            g_g = jnp.tanh(gates[:, 2 * Hp:3 * Hp])
            o_g = jax.nn.sigmoid(gates[:, 3 * Hp:4 * Hp])
            c_new = f_g * c + i_g * g_g
            h_new = o_g * jnp.tanh(c_new)
            h_out_ref[lt] = h_new.astype(h_out_ref.dtype)
            return h_new, c_new

        h_f, c_f = lax.fori_loop(0, tile_t, step,
                                 (h_scr[...], c_scr[...]), unroll=True)
        h_scr[...] = h_f
        c_scr[...] = c_f

    return kernel


def decoder_forward(seq, params, *, time_tile=8):
    """seq: (B, T, input_dim) float32. Returns (B, T, output_dim)."""
    w_ih, w_hh, b_ih, b_hh, w_out, b_out = (
        params["w_ih"], params["w_hh"], params["b_ih"], params["b_hh"],
        params["w_out"], params["b_out"])

    B, T, D_in = seq.shape
    H = w_ih.shape[0] // 4
    out_dim = w_out.shape[0]

    # ---- lane-aligned, gate-grouped weight layouts (built once, plain JAX) ----
    Hp = _round_up(H, 128)
    pad_h = Hp - H

    # W_ih^T padded: (D_in, 4*Hp); gate g lives in lanes [g*Hp, g*Hp + H)
    wih_t = jnp.transpose(
        jnp.pad(w_ih.reshape(4, H, D_in), ((0, 0), (0, pad_h), (0, 0))),
        (2, 0, 1)).reshape(D_in, 4 * Hp)
    # W_hh^T padded: (Hp, 4*Hp)
    whh_t = jnp.transpose(
        jnp.pad(w_hh.reshape(4, H, H), ((0, 0), (0, pad_h), (0, pad_h))),
        (2, 0, 1)).reshape(Hp, 4 * Hp)
    # Combined bias padded: (1, 1, 4*Hp)
    bias = jnp.pad((b_ih + b_hh).reshape(4, H),
                   ((0, 0), (0, pad_h))).reshape(1, 1, 4 * Hp)
    # W_out^T padded: (Hp, out_dim)  (padded rows are zero)
    wout_t = jnp.pad(jnp.transpose(w_out), ((0, pad_h), (0, 0)))

    # ---- hoisted input projection: one big MXU matmul, emitted time-major ----
    gates_x = jnp.einsum('btd,dg->tbg', seq.astype(jnp.float32), wih_t,
                         preferred_element_type=jnp.float32) + bias

    # ---- time chunking (amortizes per-grid-step pipeline overhead) ----
    tile_t = max(1, min(time_tile, T))
    T_pad = _round_up(T, tile_t)
    if T_pad != T:
        # Extra steps compute discardable state past the real sequence end.
        gates_x = jnp.pad(gates_x, ((0, T_pad - T), (0, 0), (0, 0)))

    kernel = _make_recurrent_kernel(Hp, tile_t)

    h_states = pl.pallas_call(
        kernel,
        out_shape=jax.ShapeDtypeStruct((T_pad, B, Hp), jnp.float32),
        grid_spec=pltpu.PrefetchScalarGridSpec(
            num_scalar_prefetch=0,
            grid=(T_pad // tile_t,),
            in_specs=[
                pl.BlockSpec((tile_t, B, 4 * Hp), lambda i: (i, 0, 0)),  # gates_x
                pl.BlockSpec((Hp, 4 * Hp), lambda i: (0, 0)),            # W_hh^T
            ],
            out_specs=pl.BlockSpec((tile_t, B, Hp), lambda i: (i, 0, 0)),
            scratch_shapes=[
                pltpu.VMEM((B, Hp), jnp.float32),   # h state
                pltpu.VMEM((B, Hp), jnp.float32),   # c state
            ],
        ),
        compiler_params=pltpu.CompilerParams(
            dimension_semantics=("arbitrary",)),    # serial recurrence over T
    )(gates_x, whh_t)

    # ---- hoisted output projection; folds the transpose back to batch-first ----
    y = jnp.einsum('tbh,ho->bto', h_states[:T], wout_t,
                   preferred_element_type=jnp.float32) + b_out.reshape(1, 1, out_dim)
    return y.astype(seq.dtype)


def decoder_reference(seq, params):
    """Pure-JAX reference matching torch.nn.LSTM(batch_first=True) + Linear."""
    w_ih, w_hh, b_ih, b_hh, w_out, b_out = (
        params["w_ih"], params["w_hh"], params["b_ih"], params["b_hh"],
        params["w_out"], params["b_out"])
    B, T, _ = seq.shape
    H = w_hh.shape[1]

    def step(carry, x_t):
        h, c = carry
        gates = x_t @ w_ih.T + h @ w_hh.T + b_ih + b_hh
        i = jax.nn.sigmoid(gates[:, 0 * H:1 * H])
        f = jax.nn.sigmoid(gates[:, 1 * H:2 * H])
        g = jnp.tanh(gates[:, 2 * H:3 * H])
        o = jax.nn.sigmoid(gates[:, 3 * H:4 * H])
        c_new = f * c + i * g
        h_new = o * jnp.tanh(c_new)
        return (h_new, c_new), h_new

    h0 = jnp.zeros((B, H), jnp.float32)
    c0 = jnp.zeros((B, H), jnp.float32)
    _, hs = jax.lax.scan(step, (h0, c0), jnp.transpose(seq, (1, 0, 2)))
    hs = jnp.transpose(hs, (1, 0, 2))              # (B, T, H)
    return hs @ w_out.T + b_out


if __name__ == "__main__":
    # Decoder(input_dim, hidden_dim, output_dim), cell='LSTM', num_layers=1
    B, T = 2, 8
    input_dim, hidden_dim, output_dim = 16, 32, 8

    key = jax.random.PRNGKey(0)
    ks = jax.random.split(key, 7)
    scale = 1.0 / jnp.sqrt(hidden_dim)

    params = {
        "w_ih": jax.random.uniform(ks[0], (4 * hidden_dim, input_dim),
                                   jnp.float32, -scale, scale),
        "w_hh": jax.random.uniform(ks[1], (4 * hidden_dim, hidden_dim),
                                   jnp.float32, -scale, scale),
        "b_ih": jax.random.uniform(ks[2], (4 * hidden_dim,),
                                   jnp.float32, -scale, scale),
        "b_hh": jax.random.uniform(ks[3], (4 * hidden_dim,),
                                   jnp.float32, -scale, scale),
        "w_out": jax.random.uniform(ks[4], (output_dim, hidden_dim),
                                    jnp.float32, -scale, scale),
        "b_out": jax.random.uniform(ks[5], (output_dim,),
                                    jnp.float32, -scale, scale),
    }

    seq = jax.random.normal(ks[6], (B, T, input_dim), jnp.float32)

    out = decoder_forward(seq, params)
    out = jax.block_until_ready(out)

    ref = decoder_reference(seq, params)
    assert out.shape == (B, T, output_dim)
    assert jnp.allclose(out, ref, atol=5e-5, rtol=5e-5), "mismatch vs reference"

    print("KERNEL_OK")
</pallas_src>

<mosaic_0001>
module attributes {stable_mosaic.version = 11 : i64} {
  func.func @kernel(%arg0: i32, %arg1: memref<8x2x512xf32, #tpu.memory_space<vmem>>, %arg2: memref<128x512xf32, #tpu.memory_space<vmem>>, %arg3: memref<8x2x128xf32, #tpu.memory_space<vmem>>, %arg4: memref<2x128xf32, #tpu.memory_space<vmem>>, %arg5: memref<2x128xf32, #tpu.memory_space<vmem>>) attributes {dimension_semantics = [#tpu.dimension_semantics<arbitrary>], iteration_bounds = array<i64: 1>, scalar_prefetch = 0 : i64, scratch_operands = 2 : i64, tpu.core_type = #tpu.core_type<tc>, window_params = [{transform_indices = @transform_0, window_bounds = array<i64: 8, 2, 512>}, {pipeline_mode = #tpu.pipeline_mode<synchronous>, transform_indices = @transform_1, window_bounds = array<i64: 128, 512>}, {transform_indices = @transform_2, window_bounds = array<i64: 8, 2, 128>}]} {
    %c0_i32 = arith.constant 0 : i32
    %0 = arith.cmpi eq, %arg0, %c0_i32 : i32
    %1 = arith.extui %0 : i1 to i32
    %c0_i32_0 = arith.constant 0 : i32
    %2 = arith.cmpi ne, %1, %c0_i32_0 : i32
    scf.if %2 {
      %cst_74 = arith.constant 0.000000e+00 : f32
      %280 = vector.broadcast %cst_74 : f32 to vector<2x128xf32>
      %c0_75 = arith.constant 0 : index
      %c0_76 = arith.constant 0 : index
      %281 = vector.load %arg4[%c0_75, %c0_76] : memref<2x128xf32, #tpu.memory_space<vmem>>, vector<2x128xf32>
      tpu.vector_store %arg4[%c0_75, %c0_76], %280 {strides = array<i32>} : memref<2x128xf32, #tpu.memory_space<vmem>>, vector<2x128xf32>,
      %cst_77 = arith.constant 0.000000e+00 : f32
      %282 = vector.broadcast %cst_77 : f32 to vector<2x128xf32>
      %c0_78 = arith.constant 0 : index
      %c0_79 = arith.constant 0 : index
      %283 = vector.load %arg5[%c0_78, %c0_79] : memref<2x128xf32, #tpu.memory_space<vmem>>, vector<2x128xf32>
      tpu.vector_store %arg5[%c0_78, %c0_79], %282 {strides = array<i32>} : memref<2x128xf32, #tpu.memory_space<vmem>>, vector<2x128xf32>,
    } else {
    }
    %c0 = arith.constant 0 : index
    %c0_1 = arith.constant 0 : index
    %3 = vector.load %arg2[%c0, %c0_1] : memref<128x512xf32, #tpu.memory_space<vmem>>, vector<128x512xf32>
    %c0_2 = arith.constant 0 : index
    %c0_3 = arith.constant 0 : index
    %4 = vector.load %arg4[%c0_2, %c0_3] : memref<2x128xf32, #tpu.memory_space<vmem>>, vector<2x128xf32>
    %c0_4 = arith.constant 0 : index
    %c0_5 = arith.constant 0 : index
    %5 = vector.load %arg5[%c0_4, %c0_5] : memref<2x128xf32, #tpu.memory_space<vmem>>, vector<2x128xf32>
    %c0_i32_6 = arith.constant 0 : i32
    %6 = arith.index_cast %c0_i32_6 : i32 to index
    %c0_7 = arith.constant 0 : index
    %c0_8 = arith.constant 0 : index
    %7 = vector.load %arg1[%6, %c0_7, %c0_8] : memref<8x2x512xf32, #tpu.memory_space<vmem>>, vector<1x2x512xf32>
    %8 = vector.shape_cast %7 : vector<1x2x512xf32> to vector<2x512xf32>
    %cst = arith.constant dense<0.000000e+00> : vector<2x512xf32>
    %9 = tpu.matmul %4, %3, %cst {dimension_numbers = #tpu.dot_dimension_numbers<[1], [0], [0], [1], [0, 0, 1, 1], [], []>} : vector<2x128xf32>, vector<128x512xf32>, vector<2x512xf32> -> vector<2x512xf32>
    %10 = arith.addf %8, %9 : vector<2x512xf32>
    %11 = vector.extract_strided_slice %10 {offsets = [0, 0], sizes = [2, 128], strides = [1, 1]} : vector<2x512xf32> to vector<2x128xf32>
    %12 = arith.negf %11 : vector<2x128xf32>
    %13 = math.exp %12 : vector<2x128xf32>
    %cst_9 = arith.constant 1.000000e+00 : f32
    %14 = vector.broadcast %cst_9 : f32 to vector<2x128xf32>
    %15 = arith.addf %14, %13 : vector<2x128xf32>
    %16 = arith.divf %14, %15 : vector<2x128xf32>
    %17 = vector.extract_strided_slice %10 {offsets = [0, 128], sizes = [2, 128], strides = [1, 1]} : vector<2x512xf32> to vector<2x128xf32>
    %18 = arith.negf %17 : vector<2x128xf32>
    %19 = math.exp %18 : vector<2x128xf32>
    %cst_10 = arith.constant 1.000000e+00 : f32
    %20 = vector.broadcast %cst_10 : f32 to vector<2x128xf32>
    %21 = arith.addf %20, %19 : vector<2x128xf32>
    %22 = arith.divf %20, %21 : vector<2x128xf32>
    %23 = vector.extract_strided_slice %10 {offsets = [0, 256], sizes = [2, 128], strides = [1, 1]} : vector<2x512xf32> to vector<2x128xf32>
    %24 = math.tanh %23 : vector<2x128xf32>
    %25 = vector.extract_strided_slice %10 {offsets = [0, 384], sizes = [2, 128], strides = [1, 1]} : vector<2x512xf32> to vector<2x128xf32>
    %26 = arith.negf %25 : vector<2x128xf32>
    %27 = math.exp %26 : vector<2x128xf32>
    %cst_11 = arith.constant 1.000000e+00 : f32
    %28 = vector.broadcast %cst_11 : f32 to vector<2x128xf32>
    %29 = arith.addf %28, %27 : vector<2x128xf32>
    %30 = arith.divf %28, %29 : vector<2x128xf32>
    %31 = arith.mulf %22, %5 : vector<2x128xf32>
    %32 = arith.mulf %16, %24 : vector<2x128xf32>
    %33 = arith.addf %31, %32 : vector<2x128xf32>
    %34 = math.tanh %33 : vector<2x128xf32>
    %35 = arith.mulf %30, %34 : vector<2x128xf32>
    %36 = arith.index_cast %c0_i32_6 : i32 to index
    %c0_12 = arith.constant 0 : index
    %c0_13 = arith.constant 0 : index
    %37 = vector.load %arg3[%36, %c0_12, %c0_13] : memref<8x2x128xf32, #tpu.memory_space<vmem>>, vector<1x2x128xf32>
    %38 = vector.shape_cast %37 : vector<1x2x128xf32> to vector<2x128xf32>
    %39 = vector.shape_cast %35 : vector<2x128xf32> to vector<1x2x128xf32>
    tpu.vector_store %arg3[%36, %c0_12, %c0_13], %39 {strides = array<i32>} : memref<8x2x128xf32, #tpu.memory_space<vmem>>, vector<1x2x128xf32>,
    %c1_i32 = arith.constant 1 : i32
    %40 = arith.index_cast %c1_i32 : i32 to index
    %c0_14 = arith.constant 0 : index
    %c0_15 = arith.constant 0 : index
    %41 = vector.load %arg1[%40, %c0_14, %c0_15] : memref<8x2x512xf32, #tpu.memory_space<vmem>>, vector<1x2x512xf32>
    %42 = vector.shape_cast %41 : vector<1x2x512xf32> to vector<2x512xf32>
    %cst_16 = arith.constant dense<0.000000e+00> : vector<2x512xf32>
    %43 = tpu.matmul %35, %3, %cst_16 {dimension_numbers = #tpu.dot_dimension_numbers<[1], [0], [0], [1], [0, 0, 1, 1], [], []>} : vector<2x128xf32>, vector<128x512xf32>, vector<2x512xf32> -> vector<2x512xf32>
    %44 = arith.addf %42, %43 : vector<2x512xf32>
    %45 = vector.extract_strided_slice %44 {offsets = [0, 0], sizes = [2, 128], strides = [1, 1]} : vector<2x512xf32> to vector<2x128xf32>
    %46 = arith.negf %45 : vector<2x128xf32>
    %47 = math.exp %46 : vector<2x128xf32>
    %cst_17 = arith.constant 1.000000e+00 : f32
    %48 = vector.broadcast %cst_17 : f32 to vector<2x128xf32>
    %49 = arith.addf %48, %47 : vector<2x128xf32>
    %50 = arith.divf %48, %49 : vector<2x128xf32>
    %51 = vector.extract_strided_slice %44 {offsets = [0, 128], sizes = [2, 128], strides = [1, 1]} : vector<2x512xf32> to vector<2x128xf32>
    %52 = arith.negf %51 : vector<2x128xf32>
    %53 = math.exp %52 : vector<2x128xf32>
    %cst_18 = arith.constant 1.000000e+00 : f32
    %54 = vector.broadcast %cst_18 : f32 to vector<2x128xf32>
    %55 = arith.addf %54, %53 : vector<2x128xf32>
    %56 = arith.divf %54, %55 : vector<2x128xf32>
    %57 = vector.extract_strided_slice %44 {offsets = [0, 256], sizes = [2, 128], strides = [1, 1]} : vector<2x512xf32> to vector<2x128xf32>
    %58 = math.tanh %57 : vector<2x128xf32>
    %59 = vector.extract_strided_slice %44 {offsets = [0, 384], sizes = [2, 128], strides = [1, 1]} : vector<2x512xf32> to vector<2x128xf32>
    %60 = arith.negf %59 : vector<2x128xf32>
    %61 = math.exp %60 : vector<2x128xf32>
    %cst_19 = arith.constant 1.000000e+00 : f32
    %62 = vector.broadcast %cst_19 : f32 to vector<2x128xf32>
    %63 = arith.addf %62, %61 : vector<2x128xf32>
    %64 = arith.divf %62, %63 : vector<2x128xf32>
    %65 = arith.mulf %56, %33 : vector<2x128xf32>
    %66 = arith.mulf %50, %58 : vector<2x128xf32>
    %67 = arith.addf %65, %66 : vector<2x128xf32>
    %68 = math.tanh %67 : vector<2x128xf32>
    %69 = arith.mulf %64, %68 : vector<2x128xf32>
    %70 = arith.index_cast %c1_i32 : i32 to index
    %c0_20 = arith.constant 0 : index
    %c0_21 = arith.constant 0 : index
    %71 = vector.load %arg3[%70, %c0_20, %c0_21] : memref<8x2x128xf32, #tpu.memory_space<vmem>>, vector<1x2x128xf32>
    %72 = vector.shape_cast %71 : vector<1x2x128xf32> to vector<2x128xf32>
    %73 = vector.shape_cast %69 : vector<2x128xf32> to vector<1x2x128xf32>
    tpu.vector_store %arg3[%70, %c0_20, %c0_21], %73 {strides = array<i32>} : memref<8x2x128xf32, #tpu.memory_space<vmem>>, vector<1x2x128xf32>,
    %c2_i32 = arith.constant 2 : i32
    %74 = arith.index_cast %c2_i32 : i32 to index
    %c0_22 = arith.constant 0 : index
    %c0_23 = arith.constant 0 : index
    %75 = vector.load %arg1[%74, %c0_22, %c0_23] : memref<8x2x512xf32, #tpu.memory_space<vmem>>, vector<1x2x512xf32>
    %76 = vector.shape_cast %75 : vector<1x2x512xf32> to vector<2x512xf32>
    %cst_24 = arith.constant dense<0.000000e+00> : vector<2x512xf32>
    %77 = tpu.matmul %69, %3, %cst_24 {dimension_numbers = #tpu.dot_dimension_numbers<[1], [0], [0], [1], [0, 0, 1, 1], [], []>} : vector<2x128xf32>, vector<128x512xf32>, vector<2x512xf32> -> vector<2x512xf32>
    %78 = arith.addf %76, %77 : vector<2x512xf32>
    %79 = vector.extract_strided_slice %78 {offsets = [0, 0], sizes = [2, 128], strides = [1, 1]} : vector<2x512xf32> to vector<2x128xf32>
    %80 = arith.negf %79 : vector<2x128xf32>
    %81 = math.exp %80 : vector<2x128xf32>
    %cst_25 = arith.constant 1.000000e+00 : f32
    %82 = vector.broadcast %cst_25 : f32 to vector<2x128xf32>
    %83 = arith.addf %82, %81 : vector<2x128xf32>
    %84 = arith.divf %82, %83 : vector<2x128xf32>
    %85 = vector.extract_strided_slice %78 {offsets = [0, 128], sizes = [2, 128], strides = [1, 1]} : vector<2x512xf32> to vector<2x128xf32>
    %86 = arith.negf %85 : vector<2x128xf32>
    %87 = math.exp %86 : vector<2x128xf32>
    %cst_26 = arith.constant 1.000000e+00 : f32
    %88 = vector.broadcast %cst_26 : f32 to vector<2x128xf32>
    %89 = arith.addf %88, %87 : vector<2x128xf32>
    %90 = arith.divf %88, %89 : vector<2x128xf32>
    %91 = vector.extract_strided_slice %78 {offsets = [0, 256], sizes = [2, 128], strides = [1, 1]} : vector<2x512xf32> to vector<2x128xf32>
    %92 = math.tanh %91 : vector<2x128xf32>
    %93 = vector.extract_strided_slice %78 {offsets = [0, 384], sizes = [2, 128], strides = [1, 1]} : vector<2x512xf32> to vector<2x128xf32>
    %94 = arith.negf %93 : vector<2x128xf32>
    %95 = math.exp %94 : vector<2x128xf32>
    %cst_27 = arith.constant 1.000000e+00 : f32
    %96 = vector.broadcast %cst_27 : f32 to vector<2x128xf32>
    %97 = arith.addf %96, %95 : vector<2x128xf32>
    %98 = arith.divf %96, %97 : vector<2x128xf32>
    %99 = arith.mulf %90, %67 : vector<2x128xf32>
    %100 = arith.mulf %84, %92 : vector<2x128xf32>
    %101 = arith.addf %99, %100 : vector<2x128xf32>
    %102 = math.tanh %101 : vector<2x128xf32>
    %103 = arith.mulf %98, %102 : vector<2x128xf32>
    %104 = arith.index_cast %c2_i32 : i32 to index
    %c0_28 = arith.constant 0 : index
    %c0_29 = arith.constant 0 : index
    %105 = vector.load %arg3[%104, %c0_28, %c0_29] : memref<8x2x128xf32, #tpu.memory_space<vmem>>, vector<1x2x128xf32>
    %106 = vector.shape_cast %105 : vector<1x2x128xf32> to vector<2x128xf32>
    %107 = vector.shape_cast %103 : vector<2x128xf32> to vector<1x2x128xf32>
    tpu.vector_store %arg3[%104, %c0_28, %c0_29], %107 {strides = array<i32>} : memref<8x2x128xf32, #tpu.memory_space<vmem>>, vector<1x2x128xf32>,
    %c3_i32 = arith.constant 3 : i32
    %108 = arith.index_cast %c3_i32 : i32 to index
    %c0_30 = arith.constant 0 : index
    %c0_31 = arith.constant 0 : index
    %109 = vector.load %arg1[%108, %c0_30, %c0_31] : memref<8x2x512xf32, #tpu.memory_space<vmem>>, vector<1x2x512xf32>
    %110 = vector.shape_cast %109 : vector<1x2x512xf32> to vector<2x512xf32>
    %cst_32 = arith.constant dense<0.000000e+00> : vector<2x512xf32>
    %111 = tpu.matmul %103, %3, %cst_32 {dimension_numbers = #tpu.dot_dimension_numbers<[1], [0], [0], [1], [0, 0, 1, 1], [], []>} : vector<2x128xf32>, vector<128x512xf32>, vector<2x512xf32> -> vector<2x512xf32>
    %112 = arith.addf %110, %111 : vector<2x512xf32>
    %113 = vector.extract_strided_slice %112 {offsets = [0, 0], sizes = [2, 128], strides = [1, 1]} : vector<2x512xf32> to vector<2x128xf32>
    %114 = arith.negf %113 : vector<2x128xf32>
    %115 = math.exp %114 : vector<2x128xf32>
    %cst_33 = arith.constant 1.000000e+00 : f32
    %116 = vector.broadcast %cst_33 : f32 to vector<2x128xf32>
    %117 = arith.addf %116, %115 : vector<2x128xf32>
    %118 = arith.divf %116, %117 : vector<2x128xf32>
    %119 = vector.extract_strided_slice %112 {offsets = [0, 128], sizes = [2, 128], strides = [1, 1]} : vector<2x512xf32> to vector<2x128xf32>
    %120 = arith.negf %119 : vector<2x128xf32>
    %121 = math.exp %120 : vector<2x128xf32>
    %cst_34 = arith.constant 1.000000e+00 : f32
    %122 = vector.broadcast %cst_34 : f32 to vector<2x128xf32>
    %123 = arith.addf %122, %121 : vector<2x128xf32>
    %124 = arith.divf %122, %123 : vector<2x128xf32>
    %125 = vector.extract_strided_slice %112 {offsets = [0, 256], sizes = [2, 128], strides = [1, 1]} : vector<2x512xf32> to vector<2x128xf32>
    %126 = math.tanh %125 : vector<2x128xf32>
    %127 = vector.extract_strided_slice %112 {offsets = [0, 384], sizes = [2, 128], strides = [1, 1]} : vector<2x512xf32> to vector<2x128xf32>
    %128 = arith.negf %127 : vector<2x128xf32>
    %129 = math.exp %128 : vector<2x128xf32>
    %cst_35 = arith.constant 1.000000e+00 : f32
    %130 = vector.broadcast %cst_35 : f32 to vector<2x128xf32>
    %131 = arith.addf %130, %129 : vector<2x128xf32>
    %132 = arith.divf %130, %131 : vector<2x128xf32>
    %133 = arith.mulf %124, %101 : vector<2x128xf32>
    %134 = arith.mulf %118, %126 : vector<2x128xf32>
    %135 = arith.addf %133, %134 : vector<2x128xf32>
    %136 = math.tanh %135 : vector<2x128xf32>
    %137 = arith.mulf %132, %136 : vector<2x128xf32>
    %138 = arith.index_cast %c3_i32 : i32 to index
    %c0_36 = arith.constant 0 : index
    %c0_37 = arith.constant 0 : index
    %139 = vector.load %arg3[%138, %c0_36, %c0_37] : memref<8x2x128xf32, #tpu.memory_space<vmem>>, vector<1x2x128xf32>
    %140 = vector.shape_cast %139 : vector<1x2x128xf32> to vector<2x128xf32>
    %141 = vector.shape_cast %137 : vector<2x128xf32> to vector<1x2x128xf32>
    tpu.vector_store %arg3[%138, %c0_36, %c0_37], %141 {strides = array<i32>} : memref<8x2x128xf32, #tpu.memory_space<vmem>>, vector<1x2x128xf32>,
    %c4_i32 = arith.constant 4 : i32
    %142 = arith.index_cast %c4_i32 : i32 to index
    %c0_38 = arith.constant 0 : index
    %c0_39 = arith.constant 0 : index
    %143 = vector.load %arg1[%142, %c0_38, %c0_39] : memref<8x2x512xf32, #tpu.memory_space<vmem>>, vector<1x2x512xf32>
    %144 = vector.shape_cast %143 : vector<1x2x512xf32> to vector<2x512xf32>
    %cst_40 = arith.constant dense<0.000000e+00> : vector<2x512xf32>
    %145 = tpu.matmul %137, %3, %cst_40 {dimension_numbers = #tpu.dot_dimension_numbers<[1], [0], [0], [1], [0, 0, 1, 1], [], []>} : vector<2x128xf32>, vector<128x512xf32>, vector<2x512xf32> -> vector<2x512xf32>
    %146 = arith.addf %144, %145 : vector<2x512xf32>
    %147 = vector.extract_strided_slice %146 {offsets = [0, 0], sizes = [2, 128], strides = [1, 1]} : vector<2x512xf32> to vector<2x128xf32>
    %148 = arith.negf %147 : vector<2x128xf32>
    %149 = math.exp %148 : vector<2x128xf32>
    %cst_41 = arith.constant 1.000000e+00 : f32
    %150 = vector.broadcast %cst_41 : f32 to vector<2x128xf32>
    %151 = arith.addf %150, %149 : vector<2x128xf32>
    %152 = arith.divf %150, %151 : vector<2x128xf32>
    %153 = vector.extract_strided_slice %146 {offsets = [0, 128], sizes = [2, 128], strides = [1, 1]} : vector<2x512xf32> to vector<2x128xf32>
    %154 = arith.negf %153 : vector<2x128xf32>
    %155 = math.exp %154 : vector<2x128xf32>
    %cst_42 = arith.constant 1.000000e+00 : f32
    %156 = vector.broadcast %cst_42 : f32 to vector<2x128xf32>
    %157 = arith.addf %156, %155 : vector<2x128xf32>
    %158 = arith.divf %156, %157 : vector<2x128xf32>
    %159 = vector.extract_strided_slice %146 {offsets = [0, 256], sizes = [2, 128], strides = [1, 1]} : vector<2x512xf32> to vector<2x128xf32>
    %160 = math.tanh %159 : vector<2x128xf32>
    %161 = vector.extract_strided_slice %146 {offsets = [0, 384], sizes = [2, 128], strides = [1, 1]} : vector<2x512xf32> to vector<2x128xf32>
    %162 = arith.negf %161 : vector<2x128xf32>
    %163 = math.exp %162 : vector<2x128xf32>
    %cst_43 = arith.constant 1.000000e+00 : f32
    %164 = vector.broadcast %cst_43 : f32 to vector<2x128xf32>
    %165 = arith.addf %164, %163 : vector<2x128xf32>
    %166 = arith.divf %164, %165 : vector<2x128xf32>
    %167 = arith.mulf %158, %135 : vector<2x128xf32>
    %168 = arith.mulf %152, %160 : vector<2x128xf32>
    %169 = arith.addf %167, %168 : vector<2x128xf32>
    %170 = math.tanh %169 : vector<2x128xf32>
    %171 = arith.mulf %166, %170 : vector<2x128xf32>
    %172 = arith.index_cast %c4_i32 : i32 to index
    %c0_44 = arith.constant 0 : index
    %c0_45 = arith.constant 0 : index
    %173 = vector.load %arg3[%172, %c0_44, %c0_45] : memref<8x2x128xf32, #tpu.memory_space<vmem>>, vector<1x2x128xf32>
    %174 = vector.shape_cast %173 : vector<1x2x128xf32> to vector<2x128xf32>
    %175 = vector.shape_cast %171 : vector<2x128xf32> to vector<1x2x128xf32>
    tpu.vector_store %arg3[%172, %c0_44, %c0_45], %175 {strides = array<i32>} : memref<8x2x128xf32, #tpu.memory_space<vmem>>, vector<1x2x128xf32>,
    %c5_i32 = arith.constant 5 : i32
    %176 = arith.index_cast %c5_i32 : i32 to index
    %c0_46 = arith.constant 0 : index
    %c0_47 = arith.constant 0 : index
    %177 = vector.load %arg1[%176, %c0_46, %c0_47] : memref<8x2x512xf32, #tpu.memory_space<vmem>>, vector<1x2x512xf32>
    %178 = vector.shape_cast %177 : vector<1x2x512xf32> to vector<2x512xf32>
    %cst_48 = arith.constant dense<0.000000e+00> : vector<2x512xf32>
    %179 = tpu.matmul %171, %3, %cst_48 {dimension_numbers = #tpu.dot_dimension_numbers<[1], [0], [0], [1], [0, 0, 1, 1], [], []>} : vector<2x128xf32>, vector<128x512xf32>, vector<2x512xf32> -> vector<2x512xf32>
    %180 = arith.addf %178, %179 : vector<2x512xf32>
    %181 = vector.extract_strided_slice %180 {offsets = [0, 0], sizes = [2, 128], strides = [1, 1]} : vector<2x512xf32> to vector<2x128xf32>
    %182 = arith.negf %181 : vector<2x128xf32>
    %183 = math.exp %182 : vector<2x128xf32>
    %cst_49 = arith.constant 1.000000e+00 : f32
    %184 = vector.broadcast %cst_49 : f32 to vector<2x128xf32>
    %185 = arith.addf %184, %183 : vector<2x128xf32>
    %186 = arith.divf %184, %185 : vector<2x128xf32>
    %187 = vector.extract_strided_slice %180 {offsets = [0, 128], sizes = [2, 128], strides = [1, 1]} : vector<2x512xf32> to vector<2x128xf32>
    %188 = arith.negf %187 : vector<2x128xf32>
    %189 = math.exp %188 : vector<2x128xf32>
    %cst_50 = arith.constant 1.000000e+00 : f32
    %190 = vector.broadcast %cst_50 : f32 to vector<2x128xf32>
    %191 = arith.addf %190, %189 : vector<2x128xf32>
    %192 = arith.divf %190, %191 : vector<2x128xf32>
    %193 = vector.extract_strided_slice %180 {offsets = [0, 256], sizes = [2, 128], strides = [1, 1]} : vector<2x512xf32> to vector<2x128xf32>
    %194 = math.tanh %193 : vector<2x128xf32>
    %195 = vector.extract_strided_slice %180 {offsets = [0, 384], sizes = [2, 128], strides = [1, 1]} : vector<2x512xf32> to vector<2x128xf32>
    %196 = arith.negf %195 : vector<2x128xf32>
    %197 = math.exp %196 : vector<2x128xf32>
    %cst_51 = arith.constant 1.000000e+00 : f32
    %198 = vector.broadcast %cst_51 : f32 to vector<2x128xf32>
    %199 = arith.addf %198, %197 : vector<2x128xf32>
    %200 = arith.divf %198, %199 : vector<2x128xf32>
    %201 = arith.mulf %192, %169 : vector<2x128xf32>
    %202 = arith.mulf %186, %194 : vector<2x128xf32>
    %203 = arith.addf %201, %202 : vector<2x128xf32>
    %204 = math.tanh %203 : vector<2x128xf32>
    %205 = arith.mulf %200, %204 : vector<2x128xf32>
    %206 = arith.index_cast %c5_i32 : i32 to index
    %c0_52 = arith.constant 0 : index
    %c0_53 = arith.constant 0 : index
    %207 = vector.load %arg3[%206, %c0_52, %c0_53] : memref<8x2x128xf32, #tpu.memory_space<vmem>>, vector<1x2x128xf32>
    %208 = vector.shape_cast %207 : vector<1x2x128xf32> to vector<2x128xf32>
    %209 = vector.shape_cast %205 : vector<2x128xf32> to vector<1x2x128xf32>
    tpu.vector_store %arg3[%206, %c0_52, %c0_53], %209 {strides = array<i32>} : memref<8x2x128xf32, #tpu.memory_space<vmem>>, vector<1x2x128xf32>,
    %c6_i32 = arith.constant 6 : i32
    %210 = arith.index_cast %c6_i32 : i32 to index
    %c0_54 = arith.constant 0 : index
    %c0_55 = arith.constant 0 : index
    %211 = vector.load %arg1[%210, %c0_54, %c0_55] : memref<8x2x512xf32, #tpu.memory_space<vmem>>, vector<1x2x512xf32>
    %212 = vector.shape_cast %211 : vector<1x2x512xf32> to vector<2x512xf32>
    %cst_56 = arith.constant dense<0.000000e+00> : vector<2x512xf32>
    %213 = tpu.matmul %205, %3, %cst_56 {dimension_numbers = #tpu.dot_dimension_numbers<[1], [0], [0], [1], [0, 0, 1, 1], [], []>} : vector<2x128xf32>, vector<128x512xf32>, vector<2x512xf32> -> vector<2x512xf32>
    %214 = arith.addf %212, %213 : vector<2x512xf32>
    %215 = vector.extract_strided_slice %214 {offsets = [0, 0], sizes = [2, 128], strides = [1, 1]} : vector<2x512xf32> to vector<2x128xf32>
    %216 = arith.negf %215 : vector<2x128xf32>
    %217 = math.exp %216 : vector<2x128xf32>
    %cst_57 = arith.constant 1.000000e+00 : f32
    %218 = vector.broadcast %cst_57 : f32 to vector<2x128xf32>
    %219 = arith.addf %218, %217 : vector<2x128xf32>
    %220 = arith.divf %218, %219 : vector<2x128xf32>
    %221 = vector.extract_strided_slice %214 {offsets = [0, 128], sizes = [2, 128], strides = [1, 1]} : vector<2x512xf32> to vector<2x128xf32>
    %222 = arith.negf %221 : vector<2x128xf32>
    %223 = math.exp %222 : vector<2x128xf32>
    %cst_58 = arith.constant 1.000000e+00 : f32
    %224 = vector.broadcast %cst_58 : f32 to vector<2x128xf32>
    %225 = arith.addf %224, %223 : vector<2x128xf32>
    %226 = arith.divf %224, %225 : vector<2x128xf32>
    %227 = vector.extract_strided_slice %214 {offsets = [0, 256], sizes = [2, 128], strides = [1, 1]} : vector<2x512xf32> to vector<2x128xf32>
    %228 = math.tanh %227 : vector<2x128xf32>
    %229 = vector.extract_strided_slice %214 {offsets = [0, 384], sizes = [2, 128], strides = [1, 1]} : vector<2x512xf32> to vector<2x128xf32>
    %230 = arith.negf %229 : vector<2x128xf32>
    %231 = math.exp %230 : vector<2x128xf32>
    %cst_59 = arith.constant 1.000000e+00 : f32
    %232 = vector.broadcast %cst_59 : f32 to vector<2x128xf32>
    %233 = arith.addf %232, %231 : vector<2x128xf32>
    %234 = arith.divf %232, %233 : vector<2x128xf32>
    %235 = arith.mulf %226, %203 : vector<2x128xf32>
    %236 = arith.mulf %220, %228 : vector<2x128xf32>
    %237 = arith.addf %235, %236 : vector<2x128xf32>
    %238 = math.tanh %237 : vector<2x128xf32>
    %239 = arith.mulf %234, %238 : vector<2x128xf32>
    %240 = arith.index_cast %c6_i32 : i32 to index
    %c0_60 = arith.constant 0 : index
    %c0_61 = arith.constant 0 : index
    %241 = vector.load %arg3[%240, %c0_60, %c0_61] : memref<8x2x128xf32, #tpu.memory_space<vmem>>, vector<1x2x128xf32>
    %242 = vector.shape_cast %241 : vector<1x2x128xf32> to vector<2x128xf32>
    %243 = vector.shape_cast %239 : vector<2x128xf32> to vector<1x2x128xf32>
    tpu.vector_store %arg3[%240, %c0_60, %c0_61], %243 {strides = array<i32>} : memref<8x2x128xf32, #tpu.memory_space<vmem>>, vector<1x2x128xf32>,
    %c7_i32 = arith.constant 7 : i32
    %244 = arith.index_cast %c7_i32 : i32 to index
    %c0_62 = arith.constant 0 : index
    %c0_63 = arith.constant 0 : index
    %245 = vector.load %arg1[%244, %c0_62, %c0_63] : memref<8x2x512xf32, #tpu.memory_space<vmem>>, vector<1x2x512xf32>
    %246 = vector.shape_cast %245 : vector<1x2x512xf32> to vector<2x512xf32>
    %cst_64 = arith.constant dense<0.000000e+00> : vector<2x512xf32>
    %247 = tpu.matmul %239, %3, %cst_64 {dimension_numbers = #tpu.dot_dimension_numbers<[1], [0], [0], [1], [0, 0, 1, 1], [], []>} : vector<2x128xf32>, vector<128x512xf32>, vector<2x512xf32> -> vector<2x512xf32>
    %248 = arith.addf %246, %247 : vector<2x512xf32>
    %249 = vector.extract_strided_slice %248 {offsets = [0, 0], sizes = [2, 128], strides = [1, 1]} : vector<2x512xf32> to vector<2x128xf32>
    %250 = arith.negf %249 : vector<2x128xf32>
    %251 = math.exp %250 : vector<2x128xf32>
    %cst_65 = arith.constant 1.000000e+00 : f32
    %252 = vector.broadcast %cst_65 : f32 to vector<2x128xf32>
    %253 = arith.addf %252, %251 : vector<2x128xf32>
    %254 = arith.divf %252, %253 : vector<2x128xf32>
    %255 = vector.extract_strided_slice %248 {offsets = [0, 128], sizes = [2, 128], strides = [1, 1]} : vector<2x512xf32> to vector<2x128xf32>
    %256 = arith.negf %255 : vector<2x128xf32>
    %257 = math.exp %256 : vector<2x128xf32>
    %cst_66 = arith.constant 1.000000e+00 : f32
    %258 = vector.broadcast %cst_66 : f32 to vector<2x128xf32>
    %259 = arith.addf %258, %257 : vector<2x128xf32>
    %260 = arith.divf %258, %259 : vector<2x128xf32>
    %261 = vector.extract_strided_slice %248 {offsets = [0, 256], sizes = [2, 128], strides = [1, 1]} : vector<2x512xf32> to vector<2x128xf32>
    %262 = math.tanh %261 : vector<2x128xf32>
    %263 = vector.extract_strided_slice %248 {offsets = [0, 384], sizes = [2, 128], strides = [1, 1]} : vector<2x512xf32> to vector<2x128xf32>
    %264 = arith.negf %263 : vector<2x128xf32>
    %265 = math.exp %264 : vector<2x128xf32>
    %cst_67 = arith.constant 1.000000e+00 : f32
    %266 = vector.broadcast %cst_67 : f32 to vector<2x128xf32>
    %267 = arith.addf %266, %265 : vector<2x128xf32>
    %268 = arith.divf %266, %267 : vector<2x128xf32>
    %269 = arith.mulf %260, %237 : vector<2x128xf32>
    %270 = arith.mulf %254, %262 : vector<2x128xf32>
    %271 = arith.addf %269, %270 : vector<2x128xf32>
    %272 = math.tanh %271 : vector<2x128xf32>
    %273 = arith.mulf %268, %272 : vector<2x128xf32>
    %274 = arith.index_cast %c7_i32 : i32 to index
    %c0_68 = arith.constant 0 : index
    %c0_69 = arith.constant 0 : index
    %275 = vector.load %arg3[%274, %c0_68, %c0_69] : memref<8x2x128xf32, #tpu.memory_space<vmem>>, vector<1x2x128xf32>
    %276 = vector.shape_cast %275 : vector<1x2x128xf32> to vector<2x128xf32>
    %277 = vector.shape_cast %273 : vector<2x128xf32> to vector<1x2x128xf32>
    tpu.vector_store %arg3[%274, %c0_68, %c0_69], %277 {strides = array<i32>} : memref<8x2x128xf32, #tpu.memory_space<vmem>>, vector<1x2x128xf32>,
    %c8_i32 = arith.constant 8 : i32
    %c0_70 = arith.constant 0 : index
    %c0_71 = arith.constant 0 : index
    %278 = vector.load %arg4[%c0_70, %c0_71] : memref<2x128xf32, #tpu.memory_space<vmem>>, vector<2x128xf32>
    tpu.vector_store %arg4[%c0_70, %c0_71], %273 {strides = array<i32>} : memref<2x128xf32, #tpu.memory_space<vmem>>, vector<2x128xf32>,
    %c0_72 = arith.constant 0 : index
    %c0_73 = arith.constant 0 : index
    %279 = vector.load %arg5[%c0_72, %c0_73] : memref<2x128xf32, #tpu.memory_space<vmem>>, vector<2x128xf32>
    tpu.vector_store %arg5[%c0_72, %c0_73], %271 {strides = array<i32>} : memref<2x128xf32, #tpu.memory_space<vmem>>, vector<2x128xf32>,
    return
  }
  func.func @transform_0(%arg0: i32) -> (i32, i32, i32) {
    %c0_i32 = arith.constant 0 : i32
    %c0_i32_0 = arith.constant 0 : i32
    %c0_i32_1 = arith.constant 0 : i32
    return %arg0, %c0_i32, %c0_i32_0 : i32, i32, i32
  }
  func.func @transform_1(%arg0: i32) -> (i32, i32) {
    %c0_i32 = arith.constant 0 : i32
    %c0_i32_0 = arith.constant 0 : i32
    %c0_i32_1 = arith.constant 0 : i32
    return %c0_i32, %c0_i32_0 : i32, i32
  }
  func.func @transform_2(%arg0: i32) -> (i32, i32, i32) {
    %c0_i32 = arith.constant 0 : i32
    %c0_i32_0 = arith.constant 0 : i32
    %c0_i32_1 = arith.constant 0 : i32
    return %arg0, %c0_i32, %c0_i32_0 : i32, i32, i32
  }
}

</mosaic_0001>

<bundles_post_ra>
// kernel: tpu_custom_call.1
= control target key start
LH: loop header
LB: loop body
LE: loop exit
PB: predicated region body
PF: predicated region fallthrough
CT: control target
= control target key end

     0   :  { %7 = vsyncpa [#allocation5], 0  ;;  %s2887_s0 = inlined_call_operand.hbm [shape: f32[8,2,512], index: 0, kind: input, shape index: {}]   ;;  %s2888_s1 = inlined_call_operand.hbm [shape: f32[128,512], index: 1, kind: input, shape index: {}]   ;;  %s2889_s2 = inlined_call_operand.hbm [shape: f32[8,2,128], index: 2, kind: output, shape index: {}]  }
   0x1   :  { %8 = vsyncpa [#allocation8], 0 }
   0x2   :  { %9 = vsyncpa [#allocation6], 0  ;;  %s2022_s9 = smov [#allocation4]  }
   0x3   :  { %s15_s10 = sshll.u32 %s2022_s9, 4  ;;  %s16_s10 = int_to_ptr.vmem [resolvable:$true] %s15_s10 }
   0x4   :  { %s1964_s11 = scalar_lea.vmem %s16_s10, 1024  ;;  %p1969_p1 = scmp.lt.s32.totalorder %s16_s10, %s16_s10 }
   0x5   :  { %p1965_p0 = scmp.ne.s32.totalorder %s16_s10, %s1964_s11  ;;  %p1970_p2 = scmp.lt.s32.totalorder %s1964_s11, %s1964_s11 }
   0x7   :  { %p1971_p3 = por %p1970_p2, %p1969_p1 }
   0x9   :  { %p1972_p4 = pnand %p1971_p3, %p1965_p0 }
   0xb   :  { %1975 = shalt.err (!%p1972_p4)
}
   0xc   :  { %s2023_s12 = smov 128   ;;  %s2024_s13 = smov 8  }
   0xd   :  { %21 = dma.hbm_to_vmem [thread:$0]  %s2887_s0, 1024, %s16_s10, [#allocation5], %s2023_s12, %s2023_s12, %s2024_s13  }
   0xe   :  { %s2025_s16 = smov [#allocation7]  }
   0xf   :  { %s27_s17 = sshll.u32 %s2025_s16, 4  ;;  %s28_s17 = int_to_ptr.vmem [resolvable:$true] %s27_s17 }
  0x10   :  { %s1984_s18 = scalar_lea.vmem %s28_s17, 8192  ;;  %p1989_p6 = scmp.lt.s32.totalorder %s28_s17, %s28_s17 }
  0x11   :  { %p1985_p5 = scmp.ne.s32.totalorder %s28_s17, %s1984_s18  ;;  %p1990_p7 = scmp.lt.s32.totalorder %s1984_s18, %s1984_s18 }
  0x13   :  { %p1991_p8 = por %p1990_p7, %p1989_p6 }
  0x15   :  { %p1992_p9 = pnand %p1991_p8, %p1985_p5 }
  0x17   :  { %1995 = shalt.err (!%p1992_p9)
}
  0x18   :  { %s2026_s19 = smov 512   ;;  %s2027_s20 = smov 32  }
  0x19   :  { %33 = dma.hbm_to_vmem [thread:$0]  %s2888_s1, 8192, %s28_s17, [#allocation8], %s2026_s19, %s2026_s19, %s2027_s20  }
  0x1a   :  { %2016 = dma.done.wait [#allocation5], 1024  }
  0x1b   :  { %2017 = vsyncadd [#allocation5], 4294966272 }
  0x1c   :  { %2018 = dma.done.wait [#allocation8], 8192  }
  0x1d   :  { %2019 = vsyncadd [#allocation8], 4294959104  ;;  %v2890_v0 = vmov 0.0   ;;  %v2058_v1 = vld [vmem:[#allocation7 + $0x1e8] sm:$0xff]  ;;  %v2060_v2 = vld [vmem:[#allocation7 + $0x1f8] sm:$0xff]  ;;  %s2030_s0 = smov [#allocation9]  }
  0x1e   :  { %177 = vmatprep.mubr.f32.mxu0 %v2890_v0  ;;  %44 = vst [vmem:[#allocation2] sm:$0x3] %v2890_v0  ;;  %45 = vst [vmem:[#allocation3] sm:$0x3] %v2890_v0  ;;  %248 = vmatprep.mubr.f32.mxu1 %v2890_v0  ;;  %v2062_v3 = vld [vmem:[#allocation7 + $0x1e0] sm:$0xff]  ;;  %v2066_v4 = vld [vmem:[#allocation7 + $0x1f0] sm:$0xff] }
  0x1f   :  { %2983 = vst [vmem:[#allocation13_spill] sm:$0xff] %v2058_v1  ;;  %2984 = vst [vmem:[#allocation14_spill] sm:$0xff] %v2060_v2  ;;  %113 = vmatprep.subr.mxu0 %v2058_v1  ;;  %184 = vmatprep.subr.mxu1 %v2060_v2  ;;  %v2068_v5 = vld [vmem:[#allocation7 + $0x1c8] sm:$0xff]  ;;  %v2070_v6 = vld [vmem:[#allocation7 + $0x1d8] sm:$0xff]  ;;  %s1717_s1 = sshll.u32 %s2030_s0, 4  ;;  %s1718_s1 = int_to_ptr.vmem [resolvable:$true] %s1717_s1 }
  0x20   :  { %114 = vmatpush1.msra.mxu0 %v2062_v3  ;;  %185 = vmatpush1.msra.mxu1 %v2066_v4  ;;  %v2074_v7 = vld [vmem:[#allocation7 + $0x1c0] sm:$0xff]  ;;  %v2076_v8 = vld [vmem:[#allocation7 + $0x1d0] sm:$0xff]  ;;  %v2078_v9 = vld [vmem:[#allocation7 + $0x1a8] sm:$0xff]  ;;  %s1996_s23 = scalar_lea.vmem %s1718_s1, 256  ;;  %p2001_p11 = scmp.lt.s32.totalorder %s1718_s1, %s1718_s1 }
  0x21   :  { %115 = vmatprep.subr.mxu0 %v2068_v5  ;;  %186 = vmatprep.subr.mxu1 %v2070_v6  ;;  %v2082_v10 = vld [vmem:[#allocation7 + $0x1b8] sm:$0xff]  ;;  %v2084_v11 = vld [vmem:[#allocation7 + $0x1a0] sm:$0xff]  ;;  %v2086_v12 = vld [vmem:[#allocation7 + $0x1b0] sm:$0xff]  ;;  %p1997_p10 = scmp.ne.s32.totalorder %s1718_s1, %s1996_s23  ;;  %p2002_p12 = scmp.lt.s32.totalorder %s1996_s23, %s1996_s23 }
  0x22   :  { %116 = vmatpush1.msra.mxu0 %v2074_v7  ;;  %187 = vmatpush1.msra.mxu1 %v2076_v8  ;;  %v2090_v13 = vld [vmem:[#allocation7 + $0x188] sm:$0xff]  ;;  %v2092_v14 = vld [vmem:[#allocation7 + $0x198] sm:$0xff]  ;;  %v2096_v15 = vld [vmem:[#allocation7 + $0x180] sm:$0xff] }
  0x23   :  { %117 = vmatprep.subr.mxu0 %v2078_v9  ;;  %188 = vmatprep.subr.mxu1 %v2082_v10  ;;  %v2098_v16 = vld [vmem:[#allocation7 + $0x190] sm:$0xff]  ;;  %v2102_v17 = vld [vmem:[#allocation7 + $0x168] sm:$0xff]  ;;  %v2104_v18 = vld [vmem:[#allocation7 + $0x178] sm:$0xff]  ;;  %p2003_p13 = por %p2002_p12, %p2001_p11 }
  0x24   :  { %118 = vmatpush1.msra.mxu0 %v2084_v11  ;;  %189 = vmatpush1.msra.mxu1 %v2086_v12  ;;  %v2108_v19 = vld [vmem:[#allocation7 + $0x160] sm:$0xff]  ;;  %v2110_v20 = vld [vmem:[#allocation7 + $0x170] sm:$0xff]  ;;  %v2114_v21 = vld [vmem:[#allocation7 + $0x148] sm:$0xff] }
  0x25   :  { %119 = vmatprep.subr.mxu0 %v2090_v13  ;;  %190 = vmatprep.subr.mxu1 %v2092_v14  ;;  %v2116_v22 = vld [vmem:[#allocation7 + $0x158] sm:$0xff]  ;;  %v2120_v23 = vld [vmem:[#allocation7 + $0x140] sm:$0xff]  ;;  %v2122_v24 = vld [vmem:[#allocation7 + $0x150] sm:$0xff]  ;;  %p2004_p0 = pnand %p2003_p13, %p1997_p10 }
  0x26   :  { %120 = vmatpush1.msra.mxu0 %v2096_v15  ;;  %191 = vmatpush1.msra.mxu1 %v2098_v16  ;;  %v2126_v25 = vld [vmem:[#allocation7 + $0x128] sm:$0xff]  ;;  %v2128_v26 = vld [vmem:[#allocation7 + $0x138] sm:$0xff]  ;;  %v2132_v27 = vld [vmem:[#allocation7 + $0x120] sm:$0xff] }
  0x27   :  { %121 = vmatprep.subr.mxu0 %v2102_v17  ;;  %192 = vmatprep.subr.mxu1 %v2104_v18  ;;  %v2134_v28 = vld [vmem:[#allocation7 + $0x130] sm:$0xff]  ;;  %v2138_v29 = vld [vmem:[#allocation7 + $0x108] sm:$0xff]  ;;  %v2140_v30 = vld [vmem:[#allocation7 + $0x118] sm:$0xff] }
  0x28   :  { %122 = vmatpush1.msra.mxu0 %v2108_v19  ;;  %193 = vmatpush1.msra.mxu1 %v2110_v20  ;;  %v2144_v31 = vld [vmem:[#allocation7 + $0x100] sm:$0xff]  ;;  %v2146_v32 = vld [vmem:[#allocation7 + $0x110] sm:$0xff]  ;;  %v2150_v33 = vld [vmem:[#allocation7 + $0xe8] sm:$0xff] }
  0x29   :  { %123 = vmatprep.subr.mxu0 %v2114_v21  ;;  %194 = vmatprep.subr.mxu1 %v2116_v22  ;;  %v2152_v34 = vld [vmem:[#allocation7 + $0xf8] sm:$0xff]  ;;  %v2156_v35 = vld [vmem:[#allocation7 + $0xe0] sm:$0xff]  ;;  %v2158_v36 = vld [vmem:[#allocation7 + $0xf0] sm:$0xff] }
  0x2a   :  { %124 = vmatpush1.msra.mxu0 %v2120_v23  ;;  %195 = vmatpush1.msra.mxu1 %v2122_v24  ;;  %v2162_v37 = vld [vmem:[#allocation7 + $0xc8] sm:$0xff]  ;;  %v2164_v38 = vld [vmem:[#allocation7 + $0xd8] sm:$0xff]  ;;  %v2168_v39 = vld [vmem:[#allocation7 + $0xc0] sm:$0xff] }
  0x2b   :  { %125 = vmatprep.subr.mxu0 %v2126_v25  ;;  %196 = vmatprep.subr.mxu1 %v2128_v26  ;;  %v2170_v40 = vld [vmem:[#allocation7 + $0xd0] sm:$0xff]  ;;  %v2174_v41 = vld [vmem:[#allocation7 + $0xa8] sm:$0xff]  ;;  %v2176_v42 = vld [vmem:[#allocation7 + $0xb8] sm:$0xff] }
  0x2c   :  { %126 = vmatpush1.msra.mxu0 %v2132_v27  ;;  %197 = vmatpush1.msra.mxu1 %v2134_v28  ;;  %v2180_v43 = vld [vmem:[#allocation7 + $0xa0] sm:$0xff]  ;;  %v2182_v44 = vld [vmem:[#allocation7 + $0xb0] sm:$0xff]  ;;  %v2186_v45 = vld [vmem:[#allocation7 + $0x88] sm:$0xff] }
  0x2d   :  { %127 = vmatprep.subr.mxu0 %v2138_v29  ;;  %198 = vmatprep.subr.mxu1 %v2140_v30  ;;  %2985 = vst [vmem:[#allocation15_spill] sm:$0xff] %v2186_v45  ;;  %v2188_v46 = vld [vmem:[#allocation7 + $0x98] sm:$0xff]  ;;  %v2192_v47 = vld [vmem:[#allocation7 + $0x80] sm:$0xff]  ;;  %v2194_v48 = vld [vmem:[#allocation7 + $0x90] sm:$0xff] }
  0x2e   :  { %128 = vmatpush1.msra.mxu0 %v2144_v31  ;;  %199 = vmatpush1.msra.mxu1 %v2146_v32  ;;  %2986 = vst [vmem:[#allocation16_spill] sm:$0xff] %v2188_v46  ;;  %2987 = vst [vmem:[#allocation17_spill] sm:$0xff] %v2192_v47  ;;  %v2198_v49 = vld [vmem:[#allocation7 + $0x68] sm:$0xff]  ;;  %v2200_v50 = vld [vmem:[#allocation7 + $0x78] sm:$0xff] }
  0x2f   :  { %129 = vmatprep.subr.mxu0 %v2150_v33  ;;  %200 = vmatprep.subr.mxu1 %v2152_v34  ;;  %2988 = vst [vmem:[#allocation18_spill] sm:$0xff] %v2194_v48  ;;  %2989 = vst [vmem:[#allocation19_spill] sm:$0xff] %v2198_v49  ;;  %v2204_v51 = vld [vmem:[#allocation7 + $0x60] sm:$0xff]  ;;  %v2206_v52 = vld [vmem:[#allocation7 + $0x70] sm:$0xff] }
  0x30   :  { %130 = vmatpush1.msra.mxu0 %v2156_v35  ;;  %201 = vmatpush1.msra.mxu1 %v2158_v36  ;;  %2990 = vst [vmem:[#allocation20_spill] sm:$0xff] %v2200_v50  ;;  %2991 = vst [vmem:[#allocation21_spill] sm:$0xff] %v2204_v51  ;;  %v2210_v53 = vld [vmem:[#allocation7 + $0x48] sm:$0xff]  ;;  %v2212_v54 = vld [vmem:[#allocation7 + $0x58] sm:$0xff] }
  0x31   :  { %131 = vmatprep.subr.mxu0 %v2162_v37  ;;  %202 = vmatprep.subr.mxu1 %v2164_v38  ;;  %2992 = vst [vmem:[#allocation22_spill] sm:$0xff] %v2206_v52  ;;  %2993 = vst [vmem:[#allocation23_spill] sm:$0xff] %v2210_v53  ;;  %v2216_v55 = vld [vmem:[#allocation7 + $0x40] sm:$0xff]  ;;  %v2218_v56 = vld [vmem:[#allocation7 + $0x50] sm:$0xff] }
  0x32   :  { %132 = vmatpush1.msra.mxu0 %v2168_v39  ;;  %203 = vmatpush1.msra.mxu1 %v2170_v40  ;;  %2994 = vst [vmem:[#allocation24_spill] sm:$0xff] %v2212_v54  ;;  %2995 = vst [vmem:[#allocation25_spill] sm:$0xff] %v2216_v55  ;;  %v2222_v57 = vld [vmem:[#allocation7 + $0x28] sm:$0xff]  ;;  %v2224_v58 = vld [vmem:[#allocation7 + $0x38] sm:$0xff] }
  0x33   :  { %133 = vmatprep.subr.mxu0 %v2174_v41  ;;  %204 = vmatprep.subr.mxu1 %v2176_v42  ;;  %2996 = vst [vmem:[#allocation26_spill] sm:$0xff] %v2218_v56  ;;  %2997 = vst [vmem:[#allocation27_spill] sm:$0xff] %v2222_v57  ;;  %v2228_v59 = vld [vmem:[#allocation7 + $0x20] sm:$0xff]  ;;  %v2230_v60 = vld [vmem:[#allocation7 + $0x30] sm:$0xff] }
  0x34   :  { %134 = vmatpush1.msra.mxu0 %v2180_v43  ;;  %205 = vmatpush1.msra.mxu1 %v2182_v44  ;;  %2998 = vst [vmem:[#allocation28_spill] sm:$0xff] %v2224_v58  ;;  %2999 = vst [vmem:[#allocation29_spill] sm:$0xff] %v2228_v59  ;;  %v2234_v61 = vld [vmem:[#allocation7 + $0x8] sm:$0xff]  ;;  %v2236_v62 = vld [vmem:[#allocation7 + $0x18] sm:$0xff] }
  0x35   :  { %135 = vmatprep.subr.mxu0 %v2186_v45  ;;  %206 = vmatprep.subr.mxu1 %v2188_v46  ;;  %3000 = vst [vmem:[#allocation30_spill] sm:$0xff] %v2230_v60  ;;  %3001 = vst [vmem:[#allocation31_spill] sm:$0xff] %v2234_v61  ;;  %v2240_v63 = vld [vmem:[#allocation7] sm:$0xff]  ;;  %v2242_v0 = vld [vmem:[#allocation7 + $0x10] sm:$0xff] }
  0x36   :  { %136 = vmatpush1.msra.mxu0 %v2192_v47  ;;  %207 = vmatpush1.msra.mxu1 %v2194_v48  ;;  %3002 = vst [vmem:[#allocation32_spill] sm:$0xff] %v2236_v62  ;;  %3003 = vst [vmem:[#allocation33_spill] sm:$0xff] %v2240_v63 }
  0x37   :  { %137 = vmatprep.subr.mxu0 %v2198_v49  ;;  %208 = vmatprep.subr.mxu1 %v2200_v50  ;;  %3004 = vst [vmem:[#allocation34_spill] sm:$0xff] %v2242_v0 }
  0x38   :  { %138 = vmatpush1.msra.mxu0 %v2204_v51  ;;  %209 = vmatpush1.msra.mxu1 %v2206_v52 }
  0x39   :  { %139 = vmatprep.subr.mxu0 %v2210_v53  ;;  %210 = vmatprep.subr.mxu1 %v2212_v54  ;;  %v110_v54 = vld [vmem:[#allocation2] sm:$0x3] }
  0x3a   :  { %140 = vmatpush1.msra.mxu0 %v2216_v55  ;;  %211 = vmatpush1.msra.mxu1 %v2218_v56 }
  0x3b   :  { %141 = vmatprep.subr.mxu0 %v2222_v57  ;;  %212 = vmatprep.subr.mxu1 %v2224_v58 }
  0x3c   :  { %142 = vmatpush1.msra.mxu0 %v2228_v59  ;;  %213 = vmatpush1.msra.mxu1 %v2230_v60 }
  0x3d   :  { %143 = vmatprep.subr.mxu0 %v2234_v61  ;;  %214 = vmatprep.subr.mxu1 %v2236_v62 }
  0x3e   :  { %144 = vmatpush1.msra.mxu0 %v2240_v63  ;;  %215 = vmatpush1.msra.mxu1 %v2242_v0 }
  0x3f   :  { %178 = vmatmul.mubr.f32.vlgmr.msra.gmra.mxu0 %v110_v54  ;;  %249 = vmatmul.mubr.f32.vlgmr.msra.gmra.mxu1 %v110_v54  ;;  %v3005_v54 = vld [vmem:[#allocation24_spill] sm:$0xff] }
  0x40   :  { %312 = vmatprep.subr.mxu0 %v2058_v1  ;;  %383 = vmatprep.subr.mxu1 %v2060_v2 }
  0x41   :  { %313 = vmatpush1.msra.mxu0 %v2062_v3  ;;  %384 = vmatpush1.msra.mxu1 %v2066_v4 }
  0x42   :  { %314 = vmatprep.subr.mxu0 %v2068_v5  ;;  %385 = vmatprep.subr.mxu1 %v2070_v6 }
  0x43   :  { %315 = vmatpush1.msra.mxu0 %v2074_v7  ;;  %386 = vmatpush1.msra.mxu1 %v2076_v8 }
  0x44   :  { %316 = vmatprep.subr.mxu0 %v2078_v9  ;;  %387 = vmatprep.subr.mxu1 %v2082_v10 }
  0x45   :  { %317 = vmatpush1.msra.mxu0 %v2084_v11  ;;  %388 = vmatpush1.msra.mxu1 %v2086_v12 }
  0x46   :  { %318 = vmatprep.subr.mxu0 %v2090_v13  ;;  %389 = vmatprep.subr.mxu1 %v2092_v14 }
  0x47   :  { %319 = vmatpush1.msra.mxu0 %v2096_v15  ;;  %390 = vmatpush1.msra.mxu1 %v2098_v16 }
  0x48   :  { %320 = vmatprep.subr.mxu0 %v2102_v17  ;;  %391 = vmatprep.subr.mxu1 %v2104_v18 }
  0x49   :  { %321 = vmatpush1.msra.mxu0 %v2108_v19  ;;  %392 = vmatpush1.msra.mxu1 %v2110_v20 }
  0x4a   :  { %322 = vmatprep.subr.mxu0 %v2114_v21  ;;  %393 = vmatprep.subr.mxu1 %v2116_v22 }
  0x4b   :  { %323 = vmatpush1.msra.mxu0 %v2120_v23  ;;  %394 = vmatpush1.msra.mxu1 %v2122_v24 }
  0x4c   :  { %324 = vmatprep.subr.mxu0 %v2126_v25  ;;  %395 = vmatprep.subr.mxu1 %v2128_v26 }
  0x4d   :  { %325 = vmatpush1.msra.mxu0 %v2132_v27  ;;  %396 = vmatpush1.msra.mxu1 %v2134_v28 }
  0x4e   :  { %326 = vmatprep.subr.mxu0 %v2138_v29  ;;  %397 = vmatprep.subr.mxu1 %v2140_v30 }
  0x4f   :  { %327 = vmatpush1.msra.mxu0 %v2144_v31  ;;  %398 = vmatpush1.msra.mxu1 %v2146_v32 }
  0x50   :  { %328 = vmatprep.subr.mxu0 %v2150_v33  ;;  %399 = vmatprep.subr.mxu1 %v2152_v34 }
  0x51   :  { %329 = vmatpush1.msra.mxu0 %v2156_v35  ;;  %400 = vmatpush1.msra.mxu1 %v2158_v36 }
  0x52   :  { %330 = vmatprep.subr.mxu0 %v2162_v37  ;;  %401 = vmatprep.subr.mxu1 %v2164_v38 }
  0x53   :  { %331 = vmatpush1.msra.mxu0 %v2168_v39  ;;  %402 = vmatpush1.msra.mxu1 %v2170_v40 }
  0x54   :  { %332 = vmatprep.subr.mxu0 %v2174_v41  ;;  %403 = vmatprep.subr.mxu1 %v2176_v42 }
  0x55   :  { %333 = vmatpush1.msra.mxu0 %v2180_v43  ;;  %404 = vmatpush1.msra.mxu1 %v2182_v44 }
  0x56   :  { %334 = vmatprep.subr.mxu0 %v2186_v45  ;;  %405 = vmatprep.subr.mxu1 %v2188_v46 }
  0x57   :  { %335 = vmatpush1.msra.mxu0 %v2192_v47  ;;  %406 = vmatpush1.msra.mxu1 %v2194_v48 }
  0x58   :  { %336 = vmatprep.subr.mxu0 %v2198_v49  ;;  %407 = vmatprep.subr.mxu1 %v2200_v50 }
  0x59   :  { %337 = vmatpush1.msra.mxu0 %v2204_v51  ;;  %408 = vmatpush1.msra.mxu1 %v2206_v52 }
  0x5a   :  { %338 = vmatprep.subr.mxu0 %v2210_v53  ;;  %409 = vmatprep.subr.mxu1 %v3005_v54  ;;  %v3006_v53 = vmov 0.0  }
  0x5b   :  { %339 = vmatpush1.msra.mxu0 %v2216_v55  ;;  %410 = vmatpush1.msra.mxu1 %v2218_v56 }
  0x5c   :  { %340 = vmatprep.subr.mxu0 %v2222_v57  ;;  %411 = vmatprep.subr.mxu1 %v2224_v58  ;;  %v2029_v58 = vmov 1983009808   ;;  %v264_v57 = vlaneseq }
  0x5d   :  { %341 = vmatpush1.msra.mxu0 %v2228_v59  ;;  %412 = vmatpush1.msra.mxu1 %v2230_v60  ;;  %v262_v59 = vunpack.c.l.s4 %v2029_v58 }
  0x5e   :  { %342 = vmatprep.subr.mxu0 %v2234_v61  ;;  %413 = vmatprep.subr.mxu1 %v2236_v62  ;;  %v265_v56 = vshrl.u32 %v264_v57, 7 }
  0x5f   :  { %343 = vmatpush1.msra.mxu0 %v2240_v63  ;;  %376 = vmatprep.mubr.f32.mxu0 %v3006_v53  ;;  %v263_v60 = vunpack.c.0.s8 %v262_v59 }
  0x60   :  { %414 = vmatpush1.msra.mxu1 %v2242_v0  ;;  %447 = vmatprep.mubr.f32.mxu1 %v3006_v53 }
  0x61   :  { %512 = vmatprep.subr.mxu0 %v2058_v1  ;;  %583 = vmatprep.subr.mxu1 %v2060_v2  ;;  %v2318_v62 = vsub.s32 %v263_v60, %v265_v56  ;;  %v112_v1 = vld [vmem:[#allocation4] sm:$0xff] }
  0xff   :  { %v179_v61 = vpop.f32.mrf.mxu0  ;;  %v250_v55 = vpop.f32.mrf.mxu1 }
 0x101   :  { %v181_v63 = vpop.f32.mrf.mxu0  ;;  %v252_v54 = vpop.f32.mrf.mxu1 }
 0x102   :  { %v259_v52 = vcombine.low %v179_v61, %v181_v63  ;;  %v260_v51 = vcombine.low %v250_v55, %v252_v54 }
 0x104   :  { %v267_v0 = vrot.slane %v259_v52, %v2318_v62  ;;  %v274_v53 = vrot.slane %v260_v51, %v2318_v62 }
 0x106   :  { %v275_v50 = vcombine.low %v267_v0, %v274_v53  ;;  %v111_v0 = vld [vmem:[#allocation3] sm:$0x3] }
 0x108   :  { %v277_v2 = vadd.f32 %v275_v50, %v112_v1 }
 0x10a   :  { %v1730_v49 = vmul.f32 -1.442695, %v277_v2  ;;  %v285_v58 = vrot.slane %v277_v2, 2  ;;  %v296_v57 = vrot.slane %v277_v2, 6  ;;  %v293_v60 = vrot.slane %v277_v2, 4 }
 0x10c   :  { %1764 = vpow2.f32 %v1730_v49  ;;  %v1731_v59 = vmul.f32 -1.442695, %v285_v58  ;;  %v1732_v48 = vmul.f32 -1.442695, %v296_v57  ;;  %v3009_v58 = vld [vmem:[#allocation18_spill] sm:$0xff]  ;;  %v3011_v57 = vld [vmem:[#allocation20_spill] sm:$0xff] }
 0x10e   :  { %1766 = vpow2.f32 %v1731_v59  ;;  %v3010_v59 = vld [vmem:[#allocation19_spill] sm:$0xff] }
 0x10f   :  { %1768 = vpow2.f32 %v1732_v48 }
 0x119   :  { %v1765_v56 = vpop.eup %1764 }
 0x11a   :  { %v281_v47 = vadd.f32 1.0, %v1765_v56  ;;  %v3012_v56 = vld [vmem:[#allocation21_spill] sm:$0xff] }
 0x11b   :  { %v1767_v46 = vpop.eup %1766 }
 0x11c   :  { %1770 = vrcp.f32 %v281_v47  ;;  %v290_v55 = vadd.f32 1.0, %v1767_v46  ;;  %v1769_v51 = vpop.eup %1768  ;;  %v3007_v46 = vld [vmem:[#allocation16_spill] sm:$0xff]  ;;  %v3008_v47 = vld [vmem:[#allocation17_spill] sm:$0xff] }
 0x11d   :  { %1772 = vtanh.f32 %v293_v60  ;;  %v301_v53 = vadd.f32 1.0, %v1769_v51  ;;  %v3013_v60 = vld [vmem:[#allocation22_spill] sm:$0xff]  ;;  %v3015_v51 = vld [vmem:[#allocation24_spill] sm:$0xff] }
 0x11e   :  { %1774 = vrcp.f32 %v290_v55  ;;  %v3014_v55 = vld [vmem:[#allocation23_spill] sm:$0xff] }
 0x11f   :  { %1776 = vrcp.f32 %v301_v53  ;;  %v3020_v53 = vld [vmem:[#allocation29_spill] sm:$0xff] }
 0x129   :  { %v1771_v52 = vpop.eup %1770 }
 0x12a   :  { %v1773_v1 = vpop.eup %1772 }
 0x12b   :  { %v1775_v50 = vpop.eup %1774  ;;  %v305_v61 = vmul.f32 %v1773_v1, %v1771_v52  ;;  %v3016_v52 = vld [vmem:[#allocation25_spill] sm:$0xff]  ;;  %v3018_v1 = vld [vmem:[#allocation27_spill] sm:$0xff] }
 0x12c   :  { %v304_v49 = vmul.f32 %v1775_v50, %v111_v0  ;;  %v1777_v2 = vpop.eup %1776  ;;  %v3017_v0 = vld [vmem:[#allocation26_spill] sm:$0xff]  ;;  %v3019_v50 = vld [vmem:[#allocation28_spill] sm:$0xff] }
 0x12e   :  { %v2322_v63 = vadd.f32 %v305_v61, %v304_v49  ;;  %v3021_v49 = vld [vmem:[#allocation30_spill] sm:$0xff]  ;;  %v3022_v61 = vld [vmem:[#allocation31_spill] sm:$0xff] }
 0x130   :  { %1778 = vtanh.f32 %v2322_v63 }
 0x13d   :  { %v1779_v54 = vpop.eup %1778 }
 0x13e   :  { %v308_v48 = vmul.f32 %v1779_v54, %v1777_v2  ;;  %v3023_v2 = vld [vmem:[#allocation32_spill] sm:$0xff]  ;;  %v3024_v54 = vld [vmem:[#allocation33_spill] sm:$0xff] }
 0x140   :  { %309 = vst [vmem:[#allocation9] sm:$0x3] %v308_v48  ;;  %377 = vmatmul.mubr.f32.vlgmr.msra.gmra.mxu0 %v308_v48  ;;  %448 = vmatmul.mubr.f32.vlgmr.msra.gmra.mxu1 %v308_v48  ;;  %v3025_v48 = vmov 0.0  }
 0x141   :  { %513 = vmatpush1.msra.mxu0 %v2062_v3  ;;  %584 = vmatpush1.msra.mxu1 %v2066_v4 }
 0x142   :  { %514 = vmatprep.subr.mxu0 %v2068_v5  ;;  %585 = vmatprep.subr.mxu1 %v2070_v6 }
 0x143   :  { %515 = vmatpush1.msra.mxu0 %v2074_v7  ;;  %586 = vmatpush1.msra.mxu1 %v2076_v8 }
 0x144   :  { %516 = vmatprep.subr.mxu0 %v2078_v9  ;;  %587 = vmatprep.subr.mxu1 %v2082_v10 }
 0x145   :  { %517 = vmatpush1.msra.mxu0 %v2084_v11  ;;  %588 = vmatpush1.msra.mxu1 %v2086_v12 }
 0x146   :  { %518 = vmatprep.subr.mxu0 %v2090_v13  ;;  %589 = vmatprep.subr.mxu1 %v2092_v14 }
 0x147   :  { %519 = vmatpush1.msra.mxu0 %v2096_v15  ;;  %590 = vmatpush1.msra.mxu1 %v2098_v16 }
 0x148   :  { %520 = vmatprep.subr.mxu0 %v2102_v17  ;;  %591 = vmatprep.subr.mxu1 %v2104_v18 }
 0x149   :  { %521 = vmatpush1.msra.mxu0 %v2108_v19  ;;  %592 = vmatpush1.msra.mxu1 %v2110_v20 }
 0x14a   :  { %522 = vmatprep.subr.mxu0 %v2114_v21  ;;  %593 = vmatprep.subr.mxu1 %v2116_v22 }
 0x14b   :  { %523 = vmatpush1.msra.mxu0 %v2120_v23  ;;  %594 = vmatpush1.msra.mxu1 %v2122_v24 }
 0x14c   :  { %524 = vmatprep.subr.mxu0 %v2126_v25  ;;  %595 = vmatprep.subr.mxu1 %v2128_v26 }
 0x14d   :  { %525 = vmatpush1.msra.mxu0 %v2132_v27  ;;  %596 = vmatpush1.msra.mxu1 %v2134_v28 }
 0x14e   :  { %526 = vmatprep.subr.mxu0 %v2138_v29  ;;  %597 = vmatprep.subr.mxu1 %v2140_v30 }
 0x14f   :  { %527 = vmatpush1.msra.mxu0 %v2144_v31  ;;  %598 = vmatpush1.msra.mxu1 %v2146_v32 }
 0x150   :  { %528 = vmatprep.subr.mxu0 %v2150_v33  ;;  %599 = vmatprep.subr.mxu1 %v2152_v34 }
 0x151   :  { %529 = vmatpush1.msra.mxu0 %v2156_v35  ;;  %600 = vmatpush1.msra.mxu1 %v2158_v36 }
 0x152   :  { %530 = vmatprep.subr.mxu0 %v2162_v37  ;;  %601 = vmatprep.subr.mxu1 %v2164_v38 }
 0x153   :  { %531 = vmatpush1.msra.mxu0 %v2168_v39  ;;  %602 = vmatpush1.msra.mxu1 %v2170_v40 }
 0x154   :  { %532 = vmatprep.subr.mxu0 %v2174_v41  ;;  %603 = vmatprep.subr.mxu1 %v2176_v42 }
 0x155   :  { %533 = vmatpush1.msra.mxu0 %v2180_v43  ;;  %604 = vmatpush1.msra.mxu1 %v2182_v44 }
 0x156   :  { %534 = vmatprep.subr.mxu0 %v2186_v45  ;;  %605 = vmatprep.subr.mxu1 %v3007_v46 }
 0x157   :  { %535 = vmatpush1.msra.mxu0 %v3008_v47  ;;  %606 = vmatpush1.msra.mxu1 %v3009_v58 }
 0x158   :  { %536 = vmatprep.subr.mxu0 %v3010_v59  ;;  %607 = vmatprep.subr.mxu1 %v3011_v57 }
 0x159   :  { %537 = vmatpush1.msra.mxu0 %v3012_v56  ;;  %608 = vmatpush1.msra.mxu1 %v3013_v60  ;;  %v311_v60 = vld [vmem:[#allocation4 + $0x8] sm:$0xff] }
 0x15a   :  { %538 = vmatprep.subr.mxu0 %v3014_v55  ;;  %609 = vmatprep.subr.mxu1 %v3015_v51  ;;  %v3026_v51 = vld [vmem:[#allocation34_spill] sm:$0xff] }
 0x15b   :  { %539 = vmatpush1.msra.mxu0 %v3016_v52  ;;  %610 = vmatpush1.msra.mxu1 %v3017_v0  ;;  %v3027_v0 = vld [vmem:[#allocation13_spill] sm:$0xff] }
 0x15c   :  { %540 = vmatprep.subr.mxu0 %v3018_v1  ;;  %611 = vmatprep.subr.mxu1 %v3019_v50  ;;  %v3028_v1 = vld [vmem:[#allocation14_spill] sm:$0xff] }
 0x15d   :  { %541 = vmatpush1.msra.mxu0 %v3020_v53  ;;  %612 = vmatpush1.msra.mxu1 %v3021_v49 }
 0x15e   :  { %542 = vmatprep.subr.mxu0 %v3022_v61  ;;  %613 = vmatprep.subr.mxu1 %v3023_v2 }
 0x15f   :  { %543 = vmatpush1.msra.mxu0 %v3024_v54  ;;  %576 = vmatprep.mubr.f32.mxu0 %v3025_v48 }
 0x160   :  { %614 = vmatpush1.msra.mxu1 %v3026_v51  ;;  %647 = vmatprep.mubr.f32.mxu1 %v3025_v48 }
 0x161   :  { %712 = vmatprep.subr.mxu0 %v3027_v0  ;;  %783 = vmatprep.subr.mxu1 %v3028_v1 }
 0x200   :  { %v378_v50 = vpop.f32.mrf.mxu0  ;;  %v449_v53 = vpop.f32.mrf.mxu1 }
 0x202   :  { %v380_v52 = vpop.f32.mrf.mxu0  ;;  %v451_v49 = vpop.f32.mrf.mxu1 }
 0x203   :  { %v458_v55 = vcombine.low %v378_v50, %v380_v52  ;;  %v459_v61 = vcombine.low %v449_v53, %v451_v49 }
 0x205   :  { %v466_v2 = vrot.slane %v458_v55, %v2318_v62  ;;  %v473_v54 = vrot.slane %v459_v61, %v2318_v62  ;;  %v3034_v61 = vld [vmem:[#allocation20_spill] sm:$0xff] }
 0x207   :  { %v474_v56 = vcombine.low %v466_v2, %v473_v54  ;;  %v3035_v2 = vld [vmem:[#allocation21_spill] sm:$0xff]  ;;  %v3036_v54 = vld [vmem:[#allocation22_spill] sm:$0xff] }
 0x209   :  { %v476_v57 = vadd.f32 %v474_v56, %v311_v60 }
 0x20b   :  { %v1733_v51 = vmul.f32 -1.442695, %v476_v57  ;;  %v484_v59 = vrot.slane %v476_v57, 2  ;;  %v495_v0 = vrot.slane %v476_v57, 6  ;;  %v492_v47 = vrot.slane %v476_v57, 4 }
 0x20d   :  { %1780 = vpow2.f32 %v1733_v51  ;;  %v1734_v48 = vmul.f32 -1.442695, %v484_v59  ;;  %v1735_v1 = vmul.f32 -1.442695, %v495_v0 }
 0x20f   :  { %1782 = vpow2.f32 %v1734_v48  ;;  %v3037_v48 = vld [vmem:[#allocation23_spill] sm:$0xff] }
 0x210   :  { %1784 = vpow2.f32 %v1735_v1  ;;  %v3033_v1 = vld [vmem:[#allocation19_spill] sm:$0xff] }
 0x21a   :  { %v1781_v58 = vpop.eup %1780 }
 0x21b   :  { %v480_v46 = vadd.f32 1.0, %v1781_v58 }
 0x21c   :  { %v1783_v45 = vpop.eup %1782 }
 0x21d   :  { %1786 = vrcp.f32 %v480_v46  ;;  %v489_v52 = vadd.f32 1.0, %v1783_v45  ;;  %v1785_v55 = vpop.eup %1784  ;;  %v3029_v45 = vld [vmem:[#allocation15_spill] sm:$0xff]  ;;  %v3031_v46 = vld [vmem:[#allocation17_spill] sm:$0xff] }
 0x21e   :  { %1788 = vtanh.f32 %v492_v47  ;;  %v500_v60 = vadd.f32 1.0, %v1785_v55  ;;  %v3032_v47 = vld [vmem:[#allocation18_spill] sm:$0xff]  ;;  %v3039_v55 = vld [vmem:[#allocation25_spill] sm:$0xff] }
 0x21f   :  { %1790 = vrcp.f32 %v489_v52  ;;  %v3038_v52 = vld [vmem:[#allocation24_spill] sm:$0xff] }
 0x220   :  { %1792 = vrcp.f32 %v500_v60  ;;  %v3043_v60 = vld [vmem:[#allocation29_spill] sm:$0xff] }
 0x22a   :  { %v1787_v50 = vpop.eup %1786 }
 0x22b   :  { %v1789_v53 = vpop.eup %1788 }
 0x22c   :  { %v1791_v56 = vpop.eup %1790  ;;  %v504_v59 = vmul.f32 %v1789_v53, %v1787_v50  ;;  %v3040_v50 = vld [vmem:[#allocation26_spill] sm:$0xff]  ;;  %v3041_v53 = vld [vmem:[#allocation27_spill] sm:$0xff] }
 0x22d   :  { %v503_v51 = vmul.f32 %v1791_v56, %v2322_v63  ;;  %v1793_v58 = vpop.eup %1792  ;;  %v3030_v63 = vld [vmem:[#allocation16_spill] sm:$0xff] }
 0x22e   :  { %v3042_v56 = vld [vmem:[#allocation28_spill] sm:$0xff] }
 0x22f   :  { %v2394_v49 = vadd.f32 %v504_v59, %v503_v51  ;;  %v3044_v51 = vld [vmem:[#allocation30_spill] sm:$0xff]  ;;  %v3045_v59 = vld [vmem:[#allocation31_spill] sm:$0xff] }
 0x231   :  { %1794 = vtanh.f32 %v2394_v49 }
 0x23e   :  { %v1795_v57 = vpop.eup %1794 }
 0x23f   :  { %v507_v0 = vmul.f32 %v1795_v57, %v1793_v58  ;;  %v3046_v58 = vld [vmem:[#allocation32_spill] sm:$0xff]  ;;  %v3047_v57 = vld [vmem:[#allocation33_spill] sm:$0xff] }
 0x241   :  { %509 = vst [vmem:[#allocation9 + $0x2] sm:$0x3] %v507_v0  ;;  %577 = vmatmul.mubr.f32.vlgmr.msra.gmra.mxu0 %v507_v0  ;;  %648 = vmatmul.mubr.f32.vlgmr.msra.gmra.mxu1 %v507_v0  ;;  %v3048_v0 = vmov 0.0  }
 0x242   :  { %713 = vmatpush1.msra.mxu0 %v2062_v3  ;;  %784 = vmatpush1.msra.mxu1 %v2066_v4 }
 0x243   :  { %714 = vmatprep.subr.mxu0 %v2068_v5  ;;  %785 = vmatprep.subr.mxu1 %v2070_v6 }
 0x244   :  { %715 = vmatpush1.msra.mxu0 %v2074_v7  ;;  %786 = vmatpush1.msra.mxu1 %v2076_v8 }
 0x245   :  { %716 = vmatprep.subr.mxu0 %v2078_v9  ;;  %787 = vmatprep.subr.mxu1 %v2082_v10 }
 0x246   :  { %717 = vmatpush1.msra.mxu0 %v2084_v11  ;;  %788 = vmatpush1.msra.mxu1 %v2086_v12 }
 0x247   :  { %718 = vmatprep.subr.mxu0 %v2090_v13  ;;  %789 = vmatprep.subr.mxu1 %v2092_v14 }
 0x248   :  { %719 = vmatpush1.msra.mxu0 %v2096_v15  ;;  %790 = vmatpush1.msra.mxu1 %v2098_v16 }
 0x249   :  { %720 = vmatprep.subr.mxu0 %v2102_v17  ;;  %791 = vmatprep.subr.mxu1 %v2104_v18 }
 0x24a   :  { %721 = vmatpush1.msra.mxu0 %v2108_v19  ;;  %792 = vmatpush1.msra.mxu1 %v2110_v20 }
 0x24b   :  { %722 = vmatprep.subr.mxu0 %v2114_v21  ;;  %793 = vmatprep.subr.mxu1 %v2116_v22 }
 0x24c   :  { %723 = vmatpush1.msra.mxu0 %v2120_v23  ;;  %794 = vmatpush1.msra.mxu1 %v2122_v24 }
 0x24d   :  { %724 = vmatprep.subr.mxu0 %v2126_v25  ;;  %795 = vmatprep.subr.mxu1 %v2128_v26 }
 0x24e   :  { %725 = vmatpush1.msra.mxu0 %v2132_v27  ;;  %796 = vmatpush1.msra.mxu1 %v2134_v28 }
 0x24f   :  { %726 = vmatprep.subr.mxu0 %v2138_v29  ;;  %797 = vmatprep.subr.mxu1 %v2140_v30 }
 0x250   :  { %727 = vmatpush1.msra.mxu0 %v2144_v31  ;;  %798 = vmatpush1.msra.mxu1 %v2146_v32 }
 0x251   :  { %728 = vmatprep.subr.mxu0 %v2150_v33  ;;  %799 = vmatprep.subr.mxu1 %v2152_v34 }
 0x252   :  { %729 = vmatpush1.msra.mxu0 %v2156_v35  ;;  %800 = vmatpush1.msra.mxu1 %v2158_v36 }
 0x253   :  { %730 = vmatprep.subr.mxu0 %v2162_v37  ;;  %801 = vmatprep.subr.mxu1 %v2164_v38 }
 0x254   :  { %731 = vmatpush1.msra.mxu0 %v2168_v39  ;;  %802 = vmatpush1.msra.mxu1 %v2170_v40 }
 0x255   :  { %732 = vmatprep.subr.mxu0 %v2174_v41  ;;  %803 = vmatprep.subr.mxu1 %v2176_v42 }
 0x256   :  { %733 = vmatpush1.msra.mxu0 %v2180_v43  ;;  %804 = vmatpush1.msra.mxu1 %v2182_v44 }
 0x257   :  { %734 = vmatprep.subr.mxu0 %v3029_v45  ;;  %805 = vmatprep.subr.mxu1 %v3030_v63 }
 0x258   :  { %735 = vmatpush1.msra.mxu0 %v3031_v46  ;;  %806 = vmatpush1.msra.mxu1 %v3032_v47 }
 0x259   :  { %736 = vmatprep.subr.mxu0 %v3033_v1  ;;  %807 = vmatprep.subr.mxu1 %v3034_v61 }
 0x25a   :  { %737 = vmatpush1.msra.mxu0 %v3035_v2  ;;  %808 = vmatpush1.msra.mxu1 %v3036_v54  ;;  %v511_v54 = vld [vmem:[#allocation4 + $0x10] sm:$0xff] }
 0x25b   :  { %738 = vmatprep.subr.mxu0 %v3037_v48  ;;  %809 = vmatprep.subr.mxu1 %v3038_v52  ;;  %v3049_v52 = vld [vmem:[#allocation34_spill] sm:$0xff] }
 0x25c   :  { %739 = vmatpush1.msra.mxu0 %v3039_v55  ;;  %810 = vmatpush1.msra.mxu1 %v3040_v50  ;;  %v3050_v50 = vld [vmem:[#allocation13_spill] sm:$0xff] }
 0x25d   :  { %740 = vmatprep.subr.mxu0 %v3041_v53  ;;  %811 = vmatprep.subr.mxu1 %v3042_v56  ;;  %v3051_v53 = vld [vmem:[#allocation14_spill] sm:$0xff] }
 0x25e   :  { %741 = vmatpush1.msra.mxu0 %v3043_v60  ;;  %812 = vmatpush1.msra.mxu1 %v3044_v51 }
 0x25f   :  { %742 = vmatprep.subr.mxu0 %v3045_v59  ;;  %813 = vmatprep.subr.mxu1 %v3046_v58 }
 0x260   :  { %743 = vmatpush1.msra.mxu0 %v3047_v57  ;;  %776 = vmatprep.mubr.f32.mxu0 %v3048_v0 }
 0x261   :  { %814 = vmatpush1.msra.mxu1 %v3049_v52  ;;  %847 = vmatprep.mubr.f32.mxu1 %v3048_v0 }
 0x262   :  { %912 = vmatprep.subr.mxu0 %v3050_v50  ;;  %983 = vmatprep.subr.mxu1 %v3051_v53 }
 0x301   :  { %v578_v56 = vpop.f32.mrf.mxu0  ;;  %v649_v60 = vpop.f32.mrf.mxu1 }
 0x303   :  { %v580_v55 = vpop.f32.mrf.mxu0  ;;  %v651_v51 = vpop.f32.mrf.mxu1 }
 0x304   :  { %v658_v48 = vcombine.low %v578_v56, %v580_v55  ;;  %v659_v59 = vcombine.low %v649_v60, %v651_v51 }
 0x306   :  { %v666_v58 = vrot.slane %v658_v48, %v2318_v62  ;;  %v673_v57 = vrot.slane %v659_v59, %v2318_v62 }
 0x308   :  { %v674_v2 = vcombine.low %v666_v58, %v673_v57 }
 0x30a   :  { %v676_v61 = vadd.f32 %v674_v2, %v511_v54 }
 0x30c   :  { %v1736_v52 = vmul.f32 -1.442695, %v676_v61  ;;  %v684_v1 = vrot.slane %v676_v61, 2  ;;  %v695_v50 = vrot.slane %v676_v61, 6  ;;  %v692_v46 = vrot.slane %v676_v61, 4 }
 0x30e   :  { %1796 = vpow2.f32 %v1736_v52  ;;  %v1737_v0 = vmul.f32 -1.442695, %v684_v1  ;;  %v1738_v53 = vmul.f32 -1.442695, %v695_v50 }
 0x310   :  { %1798 = vpow2.f32 %v1737_v0 }
 0x311   :  { %1800 = vpow2.f32 %v1738_v53 }
 0x31b   :  { %v1797_v47 = vpop.eup %1796 }
 0x31c   :  { %v680_v63 = vadd.f32 1.0, %v1797_v47 }
 0x31d   :  { %v1799_v45 = vpop.eup %1798 }
 0x31e   :  { %1802 = vrcp.f32 %v680_v63  ;;  %v689_v55 = vadd.f32 1.0, %v1799_v45  ;;  %v1801_v48 = vpop.eup %1800 }
 0x31f   :  { %1804 = vtanh.f32 %v692_v46  ;;  %v700_v54 = vadd.f32 1.0, %v1801_v48 }
 0x320   :  { %1806 = vrcp.f32 %v689_v55 }
 0x321   :  { %1808 = vrcp.f32 %v700_v54  ;;  %v2548_v54 = vld [vmem:[#allocation7 + $0x1f0] sm:$0xff] }
 0x32b   :  { %v1803_v56 = vpop.eup %1802 }
 0x32c   :  { %v1805_v60 = vpop.eup %1804 }
 0x32d   :  { %v1807_v2 = vpop.eup %1806  ;;  %v704_v1 = vmul.f32 %v1805_v60, %v1803_v56 }
 0x32e   :  { %v703_v52 = vmul.f32 %v1807_v2, %v2394_v49  ;;  %v1809_v47 = vpop.eup %1808  ;;  %v2545_v2 = vld [vmem:[#allocation7 + $0x1e0] sm:$0xff] }
 0x330   :  { %v2466_v51 = vadd.f32 %v704_v1, %v703_v52  ;;  %v2551_v52 = vld [vmem:[#allocation7 + $0x1c8] sm:$0xff]  ;;  %v2554_v1 = vld [vmem:[#allocation7 + $0x1d8] sm:$0xff] }
 0x332   :  { %1810 = vtanh.f32 %v2466_v51 }
 0x33f   :  { %v1811_v61 = vpop.eup %1810 }
 0x340   :  { %v707_v59 = vmul.f32 %v1811_v61, %v1809_v47  ;;  %v2560_v47 = vld [vmem:[#allocation7 + $0x1d0] sm:$0xff]  ;;  %v2563_v61 = vld [vmem:[#allocation7 + $0x1a8] sm:$0xff] }
 0x342   :  { %709 = vst [vmem:[#allocation9 + $0x4] sm:$0x3] %v707_v59  ;;  %777 = vmatmul.mubr.f32.vlgmr.msra.gmra.mxu0 %v707_v59  ;;  %848 = vmatmul.mubr.f32.vlgmr.msra.gmra.mxu1 %v707_v59  ;;  %v2566_v59 = vld [vmem:[#allocation7 + $0x1b8] sm:$0xff] }
 0x343   :  { %913 = vmatpush1.msra.mxu0 %v2062_v3  ;;  %984 = vmatpush1.msra.mxu1 %v2066_v4  ;;  %v3052_v3 = vld [vmem:[#allocation15_spill] sm:$0xff]  ;;  %v3053_v4 = vld [vmem:[#allocation16_spill] sm:$0xff] }
 0x344   :  { %914 = vmatprep.subr.mxu0 %v2068_v5  ;;  %985 = vmatprep.subr.mxu1 %v2070_v6  ;;  %v3054_v5 = vld [vmem:[#allocation17_spill] sm:$0xff]  ;;  %v3055_v6 = vld [vmem:[#allocation18_spill] sm:$0xff] }
 0x345   :  { %915 = vmatpush1.msra.mxu0 %v2074_v7  ;;  %986 = vmatpush1.msra.mxu1 %v2076_v8  ;;  %v3056_v7 = vld [vmem:[#allocation19_spill] sm:$0xff]  ;;  %v3057_v8 = vld [vmem:[#allocation20_spill] sm:$0xff] }
 0x346   :  { %916 = vmatprep.subr.mxu0 %v2078_v9  ;;  %987 = vmatprep.subr.mxu1 %v2082_v10  ;;  %v3058_v9 = vld [vmem:[#allocation21_spill] sm:$0xff]  ;;  %v3059_v10 = vld [vmem:[#allocation22_spill] sm:$0xff] }
 0x347   :  { %917 = vmatpush1.msra.mxu0 %v2084_v11  ;;  %988 = vmatpush1.msra.mxu1 %v2086_v12  ;;  %v3060_v11 = vld [vmem:[#allocation23_spill] sm:$0xff]  ;;  %v3061_v12 = vld [vmem:[#allocation24_spill] sm:$0xff] }
 0x348   :  { %918 = vmatprep.subr.mxu0 %v2090_v13  ;;  %989 = vmatprep.subr.mxu1 %v2092_v14  ;;  %v3062_v13 = vld [vmem:[#allocation25_spill] sm:$0xff]  ;;  %v3063_v14 = vld [vmem:[#allocation26_spill] sm:$0xff] }
 0x349   :  { %919 = vmatpush1.msra.mxu0 %v2096_v15  ;;  %990 = vmatpush1.msra.mxu1 %v2098_v16  ;;  %v3064_v15 = vld [vmem:[#allocation27_spill] sm:$0xff]  ;;  %v3065_v16 = vld [vmem:[#allocation28_spill] sm:$0xff] }
 0x34a   :  { %920 = vmatprep.subr.mxu0 %v2102_v17  ;;  %991 = vmatprep.subr.mxu1 %v2104_v18  ;;  %v3066_v17 = vld [vmem:[#allocation29_spill] sm:$0xff]  ;;  %v3067_v18 = vld [vmem:[#allocation30_spill] sm:$0xff] }
 0x34b   :  { %921 = vmatpush1.msra.mxu0 %v2108_v19  ;;  %992 = vmatpush1.msra.mxu1 %v2110_v20  ;;  %v3068_v19 = vld [vmem:[#allocation31_spill] sm:$0xff]  ;;  %v3069_v20 = vld [vmem:[#allocation32_spill] sm:$0xff] }
 0x34c   :  { %922 = vmatprep.subr.mxu0 %v2114_v21  ;;  %993 = vmatprep.subr.mxu1 %v2116_v22  ;;  %v3070_v21 = vld [vmem:[#allocation33_spill] sm:$0xff]  ;;  %v3071_v22 = vmov 0.0  }
 0x34d   :  { %923 = vmatpush1.msra.mxu0 %v2120_v23  ;;  %994 = vmatpush1.msra.mxu1 %v2122_v24  ;;  %v3072_v23 = vld [vmem:[#allocation34_spill] sm:$0xff]  ;;  %v2533_v24 = vld [vmem:[#allocation7 + $0x1e8] sm:$0xff] }
 0x34e   :  { %924 = vmatprep.subr.mxu0 %v2126_v25  ;;  %995 = vmatprep.subr.mxu1 %v2128_v26  ;;  %3073 = vst [vmem:[#allocation13_spill] sm:$0xff] %v2533_v24  ;;  %v2536_v25 = vld [vmem:[#allocation7 + $0x1f8] sm:$0xff] }
 0x34f   :  { %925 = vmatpush1.msra.mxu0 %v2132_v27  ;;  %996 = vmatpush1.msra.mxu1 %v2134_v28  ;;  %3074 = vst [vmem:[#allocation14_spill] sm:$0xff] %v2536_v25 }
 0x350   :  { %926 = vmatprep.subr.mxu0 %v2138_v29  ;;  %997 = vmatprep.subr.mxu1 %v2140_v30 }
 0x351   :  { %927 = vmatpush1.msra.mxu0 %v2144_v31  ;;  %998 = vmatpush1.msra.mxu1 %v2146_v32 }
 0x352   :  { %928 = vmatprep.subr.mxu0 %v2150_v33  ;;  %999 = vmatprep.subr.mxu1 %v2152_v34  ;;  %v711_v34 = vld [vmem:[#allocation4 + $0x18] sm:$0xff] }
 0x353   :  { %929 = vmatpush1.msra.mxu0 %v2156_v35  ;;  %1000 = vmatpush1.msra.mxu1 %v2158_v36 }
 0x354   :  { %930 = vmatprep.subr.mxu0 %v2162_v37  ;;  %1001 = vmatprep.subr.mxu1 %v2164_v38 }
 0x355   :  { %931 = vmatpush1.msra.mxu0 %v2168_v39  ;;  %1002 = vmatpush1.msra.mxu1 %v2170_v40 }
 0x356   :  { %932 = vmatprep.subr.mxu0 %v2174_v41  ;;  %1003 = vmatprep.subr.mxu1 %v2176_v42 }
 0x357   :  { %933 = vmatpush1.msra.mxu0 %v2180_v43  ;;  %1004 = vmatpush1.msra.mxu1 %v2182_v44 }
 0x358   :  { %934 = vmatprep.subr.mxu0 %v3052_v3  ;;  %1005 = vmatprep.subr.mxu1 %v3053_v4  ;;  %v2569_v3 = vld [vmem:[#allocation7 + $0x1a0] sm:$0xff]  ;;  %v2572_v4 = vld [vmem:[#allocation7 + $0x1b0] sm:$0xff] }
 0x359   :  { %935 = vmatpush1.msra.mxu0 %v3054_v5  ;;  %1006 = vmatpush1.msra.mxu1 %v3055_v6  ;;  %v2575_v5 = vld [vmem:[#allocation7 + $0x188] sm:$0xff]  ;;  %v2578_v6 = vld [vmem:[#allocation7 + $0x198] sm:$0xff] }
 0x35a   :  { %936 = vmatprep.subr.mxu0 %v3056_v7  ;;  %1007 = vmatprep.subr.mxu1 %v3057_v8  ;;  %v2581_v7 = vld [vmem:[#allocation7 + $0x180] sm:$0xff]  ;;  %v2584_v8 = vld [vmem:[#allocation7 + $0x190] sm:$0xff] }
 0x35b   :  { %937 = vmatpush1.msra.mxu0 %v3058_v9  ;;  %1008 = vmatpush1.msra.mxu1 %v3059_v10  ;;  %v2587_v9 = vld [vmem:[#allocation7 + $0x168] sm:$0xff]  ;;  %v2590_v10 = vld [vmem:[#allocation7 + $0x178] sm:$0xff] }
 0x35c   :  { %938 = vmatprep.subr.mxu0 %v3060_v11  ;;  %1009 = vmatprep.subr.mxu1 %v3061_v12  ;;  %v2593_v11 = vld [vmem:[#allocation7 + $0x160] sm:$0xff]  ;;  %v2596_v12 = vld [vmem:[#allocation7 + $0x170] sm:$0xff] }
 0x35d   :  { %939 = vmatpush1.msra.mxu0 %v3062_v13  ;;  %1010 = vmatpush1.msra.mxu1 %v3063_v14  ;;  %v2599_v13 = vld [vmem:[#allocation7 + $0x148] sm:$0xff]  ;;  %v2602_v14 = vld [vmem:[#allocation7 + $0x158] sm:$0xff] }
 0x35e   :  { %940 = vmatprep.subr.mxu0 %v3064_v15  ;;  %1011 = vmatprep.subr.mxu1 %v3065_v16  ;;  %v2605_v15 = vld [vmem:[#allocation7 + $0x140] sm:$0xff]  ;;  %v2608_v16 = vld [vmem:[#allocation7 + $0x150] sm:$0xff] }
 0x35f   :  { %941 = vmatpush1.msra.mxu0 %v3066_v17  ;;  %1012 = vmatpush1.msra.mxu1 %v3067_v18  ;;  %v2611_v17 = vld [vmem:[#allocation7 + $0x128] sm:$0xff]  ;;  %v2614_v18 = vld [vmem:[#allocation7 + $0x138] sm:$0xff] }
 0x360   :  { %942 = vmatprep.subr.mxu0 %v3068_v19  ;;  %1013 = vmatprep.subr.mxu1 %v3069_v20  ;;  %v2617_v19 = vld [vmem:[#allocation7 + $0x120] sm:$0xff]  ;;  %v2620_v20 = vld [vmem:[#allocation7 + $0x130] sm:$0xff] }
 0x361   :  { %943 = vmatpush1.msra.mxu0 %v3070_v21  ;;  %976 = vmatprep.mubr.f32.mxu0 %v3071_v22  ;;  %v2623_v21 = vld [vmem:[#allocation7 + $0x108] sm:$0xff] }
 0x362   :  { %1014 = vmatpush1.msra.mxu1 %v3072_v23  ;;  %1047 = vmatprep.mubr.f32.mxu1 %v3071_v22  ;;  %v2626_v23 = vld [vmem:[#allocation7 + $0x118] sm:$0xff] }
 0x363   :  { %1112 = vmatprep.subr.mxu0 %v2533_v24  ;;  %1183 = vmatprep.subr.mxu1 %v2536_v25 }
 0x402   :  { %v778_v26 = vpop.f32.mrf.mxu0  ;;  %v849_v27 = vpop.f32.mrf.mxu1 }
 0x404   :  { %v780_v28 = vpop.f32.mrf.mxu0  ;;  %v851_v29 = vpop.f32.mrf.mxu1 }
 0x405   :  { %v858_v30 = vcombine.low %v778_v26, %v780_v28  ;;  %v859_v31 = vcombine.low %v849_v27, %v851_v29  ;;  %v2629_v26 = vld [vmem:[#allocation7 + $0x100] sm:$0xff]  ;;  %v2632_v27 = vld [vmem:[#allocation7 + $0x110] sm:$0xff]  ;;  %v2635_v28 = vld [vmem:[#allocation7 + $0xe8] sm:$0xff] }
 0x406   :  { %v2638_v29 = vld [vmem:[#allocation7 + $0xf8] sm:$0xff] }
 0x407   :  { %v866_v32 = vrot.slane %v858_v30, %v2318_v62  ;;  %v873_v33 = vrot.slane %v859_v31, %v2318_v62  ;;  %v2641_v30 = vld [vmem:[#allocation7 + $0xe0] sm:$0xff]  ;;  %v2644_v31 = vld [vmem:[#allocation7 + $0xf0] sm:$0xff] }
 0x409   :  { %v874_v35 = vcombine.low %v866_v32, %v873_v33  ;;  %v2647_v32 = vld [vmem:[#allocation7 + $0xc8] sm:$0xff]  ;;  %v2650_v33 = vld [vmem:[#allocation7 + $0xd8] sm:$0xff] }
 0x40b   :  { %v876_v36 = vadd.f32 %v874_v35, %v711_v34  ;;  %v2653_v34 = vld [vmem:[#allocation7 + $0xc0] sm:$0xff]  ;;  %v2656_v35 = vld [vmem:[#allocation7 + $0xd0] sm:$0xff] }
 0x40d   :  { %v1739_v37 = vmul.f32 -1.442695, %v876_v36  ;;  %v884_v38 = vrot.slane %v876_v36, 2  ;;  %v895_v40 = vrot.slane %v876_v36, 6  ;;  %v892_v43 = vrot.slane %v876_v36, 4  ;;  %v2659_v36 = vld [vmem:[#allocation7 + $0xa8] sm:$0xff] }
 0x40f   :  { %1812 = vpow2.f32 %v1739_v37  ;;  %v1740_v39 = vmul.f32 -1.442695, %v884_v38  ;;  %v1741_v41 = vmul.f32 -1.442695, %v895_v40  ;;  %v2662_v37 = vld [vmem:[#allocation7 + $0xb8] sm:$0xff]  ;;  %v2665_v38 = vld [vmem:[#allocation7 + $0xa0] sm:$0xff] }
 0x410   :  { %v2671_v40 = vld [vmem:[#allocation7 + $0x88] sm:$0xff] }
 0x411   :  { %1814 = vpow2.f32 %v1740_v39  ;;  %v2668_v39 = vld [vmem:[#allocation7 + $0xb0] sm:$0xff]  ;;  %3075 = vst [vmem:[#allocation15_spill] sm:$0xff] %v2671_v40 }
 0x412   :  { %1816 = vpow2.f32 %v1741_v41  ;;  %v2674_v41 = vld [vmem:[#allocation7 + $0x98] sm:$0xff] }
 0x413   :  { %3076 = vst [vmem:[#allocation16_spill] sm:$0xff] %v2674_v41 }
 0x41c   :  { %v1813_v42 = vpop.eup %1812 }
 0x41d   :  { %v880_v44 = vadd.f32 1.0, %v1813_v42  ;;  %v2677_v42 = vld [vmem:[#allocation7 + $0x80] sm:$0xff] }
 0x41e   :  { %v1815_v49 = vpop.eup %1814  ;;  %3077 = vst [vmem:[#allocation17_spill] sm:$0xff] %v2677_v42 }
 0x41f   :  { %1818 = vrcp.f32 %v880_v44  ;;  %v889_v45 = vadd.f32 1.0, %v1815_v49  ;;  %v1817_v63 = vpop.eup %1816  ;;  %v2683_v44 = vld [vmem:[#allocation7 + $0x68] sm:$0xff]  ;;  %v2686_v49 = vld [vmem:[#allocation7 + $0x78] sm:$0xff] }
 0x420   :  { %1820 = vtanh.f32 %v892_v43  ;;  %v900_v0 = vadd.f32 1.0, %v1817_v63  ;;  %v2680_v43 = vld [vmem:[#allocation7 + $0x90] sm:$0xff]  ;;  %3079 = vst [vmem:[#allocation19_spill] sm:$0xff] %v2683_v44  ;;  %3080 = vst [vmem:[#allocation20_spill] sm:$0xff] %v2686_v49 }
 0x421   :  { %1822 = vrcp.f32 %v889_v45  ;;  %3078 = vst [vmem:[#allocation18_spill] sm:$0xff] %v2680_v43  ;;  %v2689_v45 = vld [vmem:[#allocation7 + $0x60] sm:$0xff]  ;;  %v2692_v63 = vld [vmem:[#allocation7 + $0x70] sm:$0xff] }
 0x422   :  { %1824 = vrcp.f32 %v900_v0  ;;  %3081 = vst [vmem:[#allocation21_spill] sm:$0xff] %v2689_v45  ;;  %3082 = vst [vmem:[#allocation22_spill] sm:$0xff] %v2692_v63  ;;  %v2704_v0 = vld [vmem:[#allocation7 + $0x50] sm:$0xff] }
 0x423   :  { %3086 = vst [vmem:[#allocation26_spill] sm:$0xff] %v2704_v0 }
 0x42c   :  { %v1819_v46 = vpop.eup %1818 }
 0x42d   :  { %v1821_v58 = vpop.eup %1820 }
 0x42e   :  { %v1823_v57 = vpop.eup %1822  ;;  %v904_v53 = vmul.f32 %v1821_v58, %v1819_v46  ;;  %v2695_v46 = vld [vmem:[#allocation7 + $0x48] sm:$0xff]  ;;  %v2698_v58 = vld [vmem:[#allocation7 + $0x58] sm:$0xff] }
 0x42f   :  { %v903_v50 = vmul.f32 %v1823_v57, %v2466_v51  ;;  %v1825_v48 = vpop.eup %1824  ;;  %v2557_v51 = vld [vmem:[#allocation7 + $0x1c0] sm:$0xff]  ;;  %3083 = vst [vmem:[#allocation23_spill] sm:$0xff] %v2695_v46  ;;  %3084 = vst [vmem:[#allocation24_spill] sm:$0xff] %v2698_v58 }
 0x430   :  { %v2701_v57 = vld [vmem:[#allocation7 + $0x40] sm:$0xff] }
 0x431   :  { %v2542_v55 = vadd.f32 %v904_v53, %v903_v50  ;;  %3085 = vst [vmem:[#allocation25_spill] sm:$0xff] %v2701_v57  ;;  %v2707_v50 = vld [vmem:[#allocation7 + $0x28] sm:$0xff]  ;;  %v2710_v53 = vld [vmem:[#allocation7 + $0x38] sm:$0xff] }
 0x432   :  { %3087 = vst [vmem:[#allocation27_spill] sm:$0xff] %v2707_v50  ;;  %3088 = vst [vmem:[#allocation28_spill] sm:$0xff] %v2710_v53 }
 0x433   :  { %1826 = vtanh.f32 %v2542_v55 }
 0x440   :  { %v1827_v56 = vpop.eup %1826 }
 0x441   :  { %v907_v60 = vmul.f32 %v1827_v56, %v1825_v48  ;;  %v2713_v48 = vld [vmem:[#allocation7 + $0x20] sm:$0xff]  ;;  %v2716_v56 = vld [vmem:[#allocation7 + $0x30] sm:$0xff] }
 0x442   :  { %3089 = vst [vmem:[#allocation29_spill] sm:$0xff] %v2713_v48  ;;  %3090 = vst [vmem:[#allocation30_spill] sm:$0xff] %v2716_v56 }
 0x443   :  { %909 = vst [vmem:[#allocation9 + $0x6] sm:$0x3] %v907_v60  ;;  %977 = vmatmul.mubr.f32.vlgmr.msra.gmra.mxu0 %v907_v60  ;;  %1048 = vmatmul.mubr.f32.vlgmr.msra.gmra.mxu1 %v907_v60  ;;  %v2719_v60 = vld [vmem:[#allocation7 + $0x8] sm:$0xff] }
 0x444   :  { %1113 = vmatpush1.msra.mxu0 %v2545_v2  ;;  %1184 = vmatpush1.msra.mxu1 %v2548_v54  ;;  %3091 = vst [vmem:[#allocation31_spill] sm:$0xff] %v2719_v60 }
 0x445   :  { %1114 = vmatprep.subr.mxu0 %v2551_v52  ;;  %1185 = vmatprep.subr.mxu1 %v2554_v1 }
 0x446   :  { %1115 = vmatpush1.msra.mxu0 %v2557_v51  ;;  %1186 = vmatpush1.msra.mxu1 %v2560_v47 }
 0x447   :  { %1116 = vmatprep.subr.mxu0 %v2563_v61  ;;  %1187 = vmatprep.subr.mxu1 %v2566_v59 }
 0x448   :  { %1117 = vmatpush1.msra.mxu0 %v2569_v3  ;;  %1188 = vmatpush1.msra.mxu1 %v2572_v4 }
 0x449   :  { %1118 = vmatprep.subr.mxu0 %v2575_v5  ;;  %1189 = vmatprep.subr.mxu1 %v2578_v6 }
 0x44a   :  { %1119 = vmatpush1.msra.mxu0 %v2581_v7  ;;  %1190 = vmatpush1.msra.mxu1 %v2584_v8 }
 0x44b   :  { %1120 = vmatprep.subr.mxu0 %v2587_v9  ;;  %1191 = vmatprep.subr.mxu1 %v2590_v10 }
 0x44c   :  { %1121 = vmatpush1.msra.mxu0 %v2593_v11  ;;  %1192 = vmatpush1.msra.mxu1 %v2596_v12 }
 0x44d   :  { %1122 = vmatprep.subr.mxu0 %v2599_v13  ;;  %1193 = vmatprep.subr.mxu1 %v2602_v14 }
 0x44e   :  { %1123 = vmatpush1.msra.mxu0 %v2605_v15  ;;  %1194 = vmatpush1.msra.mxu1 %v2608_v16 }
 0x44f   :  { %1124 = vmatprep.subr.mxu0 %v2611_v17  ;;  %1195 = vmatprep.subr.mxu1 %v2614_v18 }
 0x450   :  { %1125 = vmatpush1.msra.mxu0 %v2617_v19  ;;  %1196 = vmatpush1.msra.mxu1 %v2620_v20 }
 0x451   :  { %1126 = vmatprep.subr.mxu0 %v2623_v21  ;;  %1197 = vmatprep.subr.mxu1 %v2626_v23 }
 0x452   :  { %1127 = vmatpush1.msra.mxu0 %v2629_v26  ;;  %1198 = vmatpush1.msra.mxu1 %v2632_v27 }
 0x453   :  { %1128 = vmatprep.subr.mxu0 %v2635_v28  ;;  %1199 = vmatprep.subr.mxu1 %v2638_v29 }
 0x454   :  { %1129 = vmatpush1.msra.mxu0 %v2641_v30  ;;  %1200 = vmatpush1.msra.mxu1 %v2644_v31 }
 0x455   :  { %1130 = vmatprep.subr.mxu0 %v2647_v32  ;;  %1201 = vmatprep.subr.mxu1 %v2650_v33 }
 0x456   :  { %1131 = vmatpush1.msra.mxu0 %v2653_v34  ;;  %1202 = vmatpush1.msra.mxu1 %v2656_v35 }
 0x457   :  { %1132 = vmatprep.subr.mxu0 %v2659_v36  ;;  %1203 = vmatprep.subr.mxu1 %v2662_v37 }
 0x458   :  { %1133 = vmatpush1.msra.mxu0 %v2665_v38  ;;  %1204 = vmatpush1.msra.mxu1 %v2668_v39 }
 0x459   :  { %1134 = vmatprep.subr.mxu0 %v2671_v40  ;;  %1205 = vmatprep.subr.mxu1 %v2674_v41 }
 0x45a   :  { %1135 = vmatpush1.msra.mxu0 %v2677_v42  ;;  %1206 = vmatpush1.msra.mxu1 %v2680_v43 }
 0x45b   :  { %1136 = vmatprep.subr.mxu0 %v2683_v44  ;;  %1207 = vmatprep.subr.mxu1 %v2686_v49 }
 0x45c   :  { %1137 = vmatpush1.msra.mxu0 %v2689_v45  ;;  %1208 = vmatpush1.msra.mxu1 %v2692_v63  ;;  %v911_v63 = vld [vmem:[#allocation4 + $0x20] sm:$0xff] }
 0x45d   :  { %1138 = vmatprep.subr.mxu0 %v2695_v46  ;;  %1209 = vmatprep.subr.mxu1 %v2698_v58 }
 0x45e   :  { %1139 = vmatpush1.msra.mxu0 %v2701_v57  ;;  %1210 = vmatpush1.msra.mxu1 %v2704_v0  ;;  %v2722_v0 = vld [vmem:[#allocation7 + $0x18] sm:$0xff] }
 0x45f   :  { %1140 = vmatprep.subr.mxu0 %v2707_v50  ;;  %1211 = vmatprep.subr.mxu1 %v2710_v53  ;;  %3092 = vst [vmem:[#allocation32_spill] sm:$0xff] %v2722_v0  ;;  %v2725_v50 = vld [vmem:[#allocation7] sm:$0xff]  ;;  %v2729_v53 = vld [vmem:[#allocation7 + $0x10] sm:$0xff] }
 0x460   :  { %1141 = vmatpush1.msra.mxu0 %v2713_v48  ;;  %1212 = vmatpush1.msra.mxu1 %v2716_v56  ;;  %3093 = vst [vmem:[#allocation33_spill] sm:$0xff] %v2725_v50  ;;  %3094 = vst [vmem:[#allocation34_spill] sm:$0xff] %v2729_v53 }
 0x461   :  { %1142 = vmatprep.subr.mxu0 %v2719_v60  ;;  %1213 = vmatprep.subr.mxu1 %v2722_v0 }
 0x462   :  { %1143 = vmatpush1.msra.mxu0 %v2725_v50  ;;  %1176 = vmatprep.mubr.f32.mxu0 %v3071_v22 }
 0x463   :  { %1214 = vmatpush1.msra.mxu1 %v2729_v53  ;;  %1247 = vmatprep.mubr.f32.mxu1 %v3071_v22 }
 0x464   :  { %1312 = vmatprep.subr.mxu0 %v2533_v24  ;;  %1383 = vmatprep.subr.mxu1 %v2536_v25 }
 0x503   :  { %v978_v60 = vpop.f32.mrf.mxu0  ;;  %v1049_v56 = vpop.f32.mrf.mxu1 }
 0x505   :  { %v980_v48 = vpop.f32.mrf.mxu0  ;;  %v1051_v0 = vpop.f32.mrf.mxu1 }
 0x506   :  { %v1058_v57 = vcombine.low %v978_v60, %v980_v48  ;;  %v1059_v58 = vcombine.low %v1049_v56, %v1051_v0  ;;  %v3101_v48 = vld [vmem:[#allocation21_spill] sm:$0xff]  ;;  %v3102_v56 = vld [vmem:[#allocation22_spill] sm:$0xff]  ;;  %v3103_v60 = vld [vmem:[#allocation23_spill] sm:$0xff] }
 0x508   :  { %v1066_v50 = vrot.slane %v1058_v57, %v2318_v62  ;;  %v1073_v46 = vrot.slane %v1059_v58, %v2318_v62 }
 0x50a   :  { %v1074_v45 = vcombine.low %v1066_v50, %v1073_v46 }
 0x50c   :  { %v1076_v49 = vadd.f32 %v1074_v45, %v911_v63 }
 0x50e   :  { %v1742_v53 = vmul.f32 -1.442695, %v1076_v49  ;;  %v1084_v44 = vrot.slane %v1076_v49, 2  ;;  %v1095_v24 = vrot.slane %v1076_v49, 6  ;;  %v1092_v42 = vrot.slane %v1076_v49, 4  ;;  %v3099_v49 = vld [vmem:[#allocation19_spill] sm:$0xff] }
 0x510   :  { %1828 = vpow2.f32 %v1742_v53  ;;  %v1743_v22 = vmul.f32 -1.442695, %v1084_v44  ;;  %v1744_v25 = vmul.f32 -1.442695, %v1095_v24  ;;  %v3100_v53 = vld [vmem:[#allocation20_spill] sm:$0xff] }
 0x512   :  { %1830 = vpow2.f32 %v1743_v22 }
 0x513   :  { %1832 = vpow2.f32 %v1744_v25 }
 0x51d   :  { %v1829_v43 = vpop.eup %1828 }
 0x51e   :  { %v1080_v41 = vadd.f32 1.0, %v1829_v43 }
 0x51f   :  { %v1831_v40 = vpop.eup %1830 }
 0x520   :  { %1834 = vrcp.f32 %v1080_v41  ;;  %v1089_v0 = vadd.f32 1.0, %v1831_v40  ;;  %v1833_v58 = vpop.eup %1832  ;;  %v3096_v40 = vld [vmem:[#allocation16_spill] sm:$0xff]  ;;  %v3097_v41 = vld [vmem:[#allocation17_spill] sm:$0xff] }
 0x521   :  { %1836 = vtanh.f32 %v1092_v42  ;;  %v1100_v63 = vadd.f32 1.0, %v1833_v58  ;;  %v3098_v42 = vld [vmem:[#allocation18_spill] sm:$0xff]  ;;  %v3105_v58 = vld [vmem:[#allocation25_spill] sm:$0xff] }
 0x522   :  { %1838 = vrcp.f32 %v1089_v0  ;;  %v3104_v0 = vld [vmem:[#allocation24_spill] sm:$0xff] }
 0x523   :  { %1840 = vrcp.f32 %v1100_v63  ;;  %v3109_v63 = vld [vmem:[#allocation29_spill] sm:$0xff] }
 0x52d   :  { %v1835_v57 = vpop.eup %1834 }
 0x52e   :  { %v1837_v46 = vpop.eup %1836 }
 0x52f   :  { %v1839_v45 = vpop.eup %1838  ;;  %v1104_v44 = vmul.f32 %v1837_v46, %v1835_v57  ;;  %v3106_v57 = vld [vmem:[#allocation26_spill] sm:$0xff]  ;;  %v3107_v46 = vld [vmem:[#allocation27_spill] sm:$0xff] }
 0x530   :  { %v1103_v50 = vmul.f32 %v1839_v45, %v2542_v55  ;;  %v1841_v24 = vpop.eup %1840  ;;  %v3095_v55 = vld [vmem:[#allocation15_spill] sm:$0xff]  ;;  %v3108_v45 = vld [vmem:[#allocation28_spill] sm:$0xff] }
 0x532   :  { %v2738_v22 = vadd.f32 %v1104_v44, %v1103_v50  ;;  %v3110_v50 = vld [vmem:[#allocation30_spill] sm:$0xff]  ;;  %v3111_v44 = vld [vmem:[#allocation31_spill] sm:$0xff] }
 0x534   :  { %1842 = vtanh.f32 %v2738_v22 }
 0x541   :  { %v1843_v43 = vpop.eup %1842 }
 0x542   :  { %v1107_v25 = vmul.f32 %v1843_v43, %v1841_v24  ;;  %v3112_v24 = vld [vmem:[#allocation32_spill] sm:$0xff]  ;;  %v3113_v43 = vld [vmem:[#allocation33_spill] sm:$0xff] }
 0x544   :  { %1109 = vst [vmem:[#allocation9 + $0x8] sm:$0x3] %v1107_v25  ;;  %1177 = vmatmul.mubr.f32.vlgmr.msra.gmra.mxu0 %v1107_v25  ;;  %1248 = vmatmul.mubr.f32.vlgmr.msra.gmra.mxu1 %v1107_v25  ;;  %v3114_v25 = vmov 0.0  }
 0x545   :  { %1313 = vmatpush1.msra.mxu0 %v2545_v2  ;;  %1384 = vmatpush1.msra.mxu1 %v2548_v54 }
 0x546   :  { %1314 = vmatprep.subr.mxu0 %v2551_v52  ;;  %1385 = vmatprep.subr.mxu1 %v2554_v1 }
 0x547   :  { %1315 = vmatpush1.msra.mxu0 %v2557_v51  ;;  %1386 = vmatpush1.msra.mxu1 %v2560_v47 }
 0x548   :  { %1316 = vmatprep.subr.mxu0 %v2563_v61  ;;  %1387 = vmatprep.subr.mxu1 %v2566_v59 }
 0x549   :  { %1317 = vmatpush1.msra.mxu0 %v2569_v3  ;;  %1388 = vmatpush1.msra.mxu1 %v2572_v4 }
 0x54a   :  { %1318 = vmatprep.subr.mxu0 %v2575_v5  ;;  %1389 = vmatprep.subr.mxu1 %v2578_v6 }
 0x54b   :  { %1319 = vmatpush1.msra.mxu0 %v2581_v7  ;;  %1390 = vmatpush1.msra.mxu1 %v2584_v8 }
 0x54c   :  { %1320 = vmatprep.subr.mxu0 %v2587_v9  ;;  %1391 = vmatprep.subr.mxu1 %v2590_v10 }
 0x54d   :  { %1321 = vmatpush1.msra.mxu0 %v2593_v11  ;;  %1392 = vmatpush1.msra.mxu1 %v2596_v12 }
 0x54e   :  { %1322 = vmatprep.subr.mxu0 %v2599_v13  ;;  %1393 = vmatprep.subr.mxu1 %v2602_v14 }
 0x54f   :  { %1323 = vmatpush1.msra.mxu0 %v2605_v15  ;;  %1394 = vmatpush1.msra.mxu1 %v2608_v16 }
 0x550   :  { %1324 = vmatprep.subr.mxu0 %v2611_v17  ;;  %1395 = vmatprep.subr.mxu1 %v2614_v18 }
 0x551   :  { %1325 = vmatpush1.msra.mxu0 %v2617_v19  ;;  %1396 = vmatpush1.msra.mxu1 %v2620_v20 }
 0x552   :  { %1326 = vmatprep.subr.mxu0 %v2623_v21  ;;  %1397 = vmatprep.subr.mxu1 %v2626_v23 }
 0x553   :  { %1327 = vmatpush1.msra.mxu0 %v2629_v26  ;;  %1398 = vmatpush1.msra.mxu1 %v2632_v27 }
 0x554   :  { %1328 = vmatprep.subr.mxu0 %v2635_v28  ;;  %1399 = vmatprep.subr.mxu1 %v2638_v29 }
 0x555   :  { %1329 = vmatpush1.msra.mxu0 %v2641_v30  ;;  %1400 = vmatpush1.msra.mxu1 %v2644_v31 }
 0x556   :  { %1330 = vmatprep.subr.mxu0 %v2647_v32  ;;  %1401 = vmatprep.subr.mxu1 %v2650_v33 }
 0x557   :  { %1331 = vmatpush1.msra.mxu0 %v2653_v34  ;;  %1402 = vmatpush1.msra.mxu1 %v2656_v35 }
 0x558   :  { %1332 = vmatprep.subr.mxu0 %v2659_v36  ;;  %1403 = vmatprep.subr.mxu1 %v2662_v37 }
 0x559   :  { %1333 = vmatpush1.msra.mxu0 %v2665_v38  ;;  %1404 = vmatpush1.msra.mxu1 %v2668_v39 }
 0x55a   :  { %1334 = vmatprep.subr.mxu0 %v3095_v55  ;;  %1405 = vmatprep.subr.mxu1 %v3096_v40 }
 0x55b   :  { %1335 = vmatpush1.msra.mxu0 %v3097_v41  ;;  %1406 = vmatpush1.msra.mxu1 %v3098_v42 }
 0x55c   :  { %1336 = vmatprep.subr.mxu0 %v3099_v49  ;;  %1407 = vmatprep.subr.mxu1 %v3100_v53 }
 0x55d   :  { %1337 = vmatpush1.msra.mxu0 %v3101_v48  ;;  %1408 = vmatpush1.msra.mxu1 %v3102_v56  ;;  %v1111_v56 = vld [vmem:[#allocation4 + $0x28] sm:$0xff] }
 0x55e   :  { %1338 = vmatprep.subr.mxu0 %v3103_v60  ;;  %1409 = vmatprep.subr.mxu1 %v3104_v0  ;;  %v3115_v0 = vld [vmem:[#allocation34_spill] sm:$0xff] }
 0x55f   :  { %1339 = vmatpush1.msra.mxu0 %v3105_v58  ;;  %1410 = vmatpush1.msra.mxu1 %v3106_v57  ;;  %v3116_v57 = vld [vmem:[#allocation13_spill] sm:$0xff] }
 0x560   :  { %1340 = vmatprep.subr.mxu0 %v3107_v46  ;;  %1411 = vmatprep.subr.mxu1 %v3108_v45  ;;  %v3117_v46 = vld [vmem:[#allocation14_spill] sm:$0xff] }
 0x561   :  { %1341 = vmatpush1.msra.mxu0 %v3109_v63  ;;  %1412 = vmatpush1.msra.mxu1 %v3110_v50 }
 0x562   :  { %1342 = vmatprep.subr.mxu0 %v3111_v44  ;;  %1413 = vmatprep.subr.mxu1 %v3112_v24 }
 0x563   :  { %1343 = vmatpush1.msra.mxu0 %v3113_v43  ;;  %1376 = vmatprep.mubr.f32.mxu0 %v3114_v25 }
 0x564   :  { %1414 = vmatpush1.msra.mxu1 %v3115_v0  ;;  %1447 = vmatprep.mubr.f32.mxu1 %v3114_v25 }
 0x565   :  { %1512 = vmatprep.subr.mxu0 %v3116_v57  ;;  %1583 = vmatprep.subr.mxu1 %v3117_v46 }
 0x604   :  { %v1178_v45 = vpop.f32.mrf.mxu0  ;;  %v1249_v63 = vpop.f32.mrf.mxu1 }
 0x606   :  { %v1180_v58 = vpop.f32.mrf.mxu0  ;;  %v1251_v50 = vpop.f32.mrf.mxu1 }
 0x607   :  { %v1258_v60 = vcombine.low %v1178_v45, %v1180_v58  ;;  %v1259_v44 = vcombine.low %v1249_v63, %v1251_v50 }
 0x609   :  { %v1266_v24 = vrot.slane %v1258_v60, %v2318_v62  ;;  %v1273_v43 = vrot.slane %v1259_v44, %v2318_v62 }
 0x60b   :  { %v1274_v48 = vcombine.low %v1266_v24, %v1273_v43 }
 0x60d   :  { %v1276_v53 = vadd.f32 %v1274_v48, %v1111_v56 }
 0x60f   :  { %v1745_v0 = vmul.f32 -1.442695, %v1276_v53  ;;  %v1284_v49 = vrot.slane %v1276_v53, 2  ;;  %v1295_v57 = vrot.slane %v1276_v53, 6  ;;  %v1292_v41 = vrot.slane %v1276_v53, 4 }
 0x611   :  { %1844 = vpow2.f32 %v1745_v0  ;;  %v1746_v25 = vmul.f32 -1.442695, %v1284_v49  ;;  %v1747_v46 = vmul.f32 -1.442695, %v1295_v57 }
 0x613   :  { %1846 = vpow2.f32 %v1746_v25 }
 0x614   :  { %1848 = vpow2.f32 %v1747_v46 }
 0x61e   :  { %v1845_v42 = vpop.eup %1844 }
 0x61f   :  { %v1280_v40 = vadd.f32 1.0, %v1845_v42 }
 0x620   :  { %v1847_v55 = vpop.eup %1846 }
 0x621   :  { %1850 = vrcp.f32 %v1280_v40  ;;  %v1289_v58 = vadd.f32 1.0, %v1847_v55  ;;  %v1849_v60 = vpop.eup %1848 }
 0x622   :  { %1852 = vtanh.f32 %v1292_v41  ;;  %v1300_v56 = vadd.f32 1.0, %v1849_v60 }
 0x623   :  { %1854 = vrcp.f32 %v1289_v58 }
 0x624   :  { %1856 = vrcp.f32 %v1300_v56 }
 0x62e   :  { %v1851_v45 = vpop.eup %1850 }
 0x62f   :  { %v1853_v63 = vpop.eup %1852 }
 0x630   :  { %v1855_v48 = vpop.eup %1854  ;;  %v1304_v49 = vmul.f32 %v1853_v63, %v1851_v45 }
 0x631   :  { %v1303_v0 = vmul.f32 %v1855_v48, %v2738_v22  ;;  %v1857_v42 = vpop.eup %1856 }
 0x633   :  { %v2810_v50 = vadd.f32 %v1304_v49, %v1303_v0 }
 0x635   :  { %1858 = vtanh.f32 %v2810_v50 }
 0x642   :  { %v1859_v53 = vpop.eup %1858 }
 0x643   :  { %v1307_v44 = vmul.f32 %v1859_v53, %v1857_v42  ;;  %v1511_v53 = vld [vmem:[#allocation4 + $0x38] sm:$0xff] }
 0x645   :  { %1309 = vst [vmem:[#allocation9 + $0xa] sm:$0x3] %v1307_v44  ;;  %1377 = vmatmul.mubr.f32.vlgmr.msra.gmra.mxu0 %v1307_v44  ;;  %1448 = vmatmul.mubr.f32.vlgmr.msra.gmra.mxu1 %v1307_v44 }
 0x646   :  { %1513 = vmatpush1.msra.mxu0 %v2545_v2  ;;  %1584 = vmatpush1.msra.mxu1 %v2548_v54  ;;  %v3118_v2 = vld [vmem:[#allocation15_spill] sm:$0xff]  ;;  %v3119_v54 = vld [vmem:[#allocation16_spill] sm:$0xff] }
 0x647   :  { %1514 = vmatprep.subr.mxu0 %v2551_v52  ;;  %1585 = vmatprep.subr.mxu1 %v2554_v1  ;;  %v3120_v52 = vld [vmem:[#allocation17_spill] sm:$0xff]  ;;  %v3121_v1 = vld [vmem:[#allocation18_spill] sm:$0xff] }
 0x648   :  { %1515 = vmatpush1.msra.mxu0 %v2557_v51  ;;  %1586 = vmatpush1.msra.mxu1 %v2560_v47  ;;  %v3122_v51 = vld [vmem:[#allocation19_spill] sm:$0xff]  ;;  %v3123_v47 = vld [vmem:[#allocation20_spill] sm:$0xff] }
 0x649   :  { %1516 = vmatprep.subr.mxu0 %v2563_v61  ;;  %1587 = vmatprep.subr.mxu1 %v2566_v59  ;;  %v3124_v61 = vld [vmem:[#allocation21_spill] sm:$0xff]  ;;  %v3125_v59 = vld [vmem:[#allocation22_spill] sm:$0xff] }
 0x64a   :  { %1517 = vmatpush1.msra.mxu0 %v2569_v3  ;;  %1588 = vmatpush1.msra.mxu1 %v2572_v4  ;;  %v3126_v3 = vld [vmem:[#allocation23_spill] sm:$0xff]  ;;  %v3127_v4 = vld [vmem:[#allocation24_spill] sm:$0xff] }
 0x64b   :  { %1518 = vmatprep.subr.mxu0 %v2575_v5  ;;  %1589 = vmatprep.subr.mxu1 %v2578_v6  ;;  %v3128_v5 = vld [vmem:[#allocation25_spill] sm:$0xff]  ;;  %v3129_v6 = vld [vmem:[#allocation26_spill] sm:$0xff] }
 0x64c   :  { %1519 = vmatpush1.msra.mxu0 %v2581_v7  ;;  %1590 = vmatpush1.msra.mxu1 %v2584_v8  ;;  %v3130_v7 = vld [vmem:[#allocation27_spill] sm:$0xff]  ;;  %v3131_v8 = vld [vmem:[#allocation28_spill] sm:$0xff] }
 0x64d   :  { %1520 = vmatprep.subr.mxu0 %v2587_v9  ;;  %1591 = vmatprep.subr.mxu1 %v2590_v10  ;;  %v3132_v9 = vld [vmem:[#allocation29_spill] sm:$0xff]  ;;  %v3133_v10 = vld [vmem:[#allocation30_spill] sm:$0xff] }
 0x64e   :  { %1521 = vmatpush1.msra.mxu0 %v2593_v11  ;;  %1592 = vmatpush1.msra.mxu1 %v2596_v12  ;;  %v3134_v11 = vld [vmem:[#allocation31_spill] sm:$0xff]  ;;  %v3135_v12 = vld [vmem:[#allocation32_spill] sm:$0xff] }
 0x64f   :  { %1522 = vmatprep.subr.mxu0 %v2599_v13  ;;  %1593 = vmatprep.subr.mxu1 %v2602_v14  ;;  %v3136_v13 = vld [vmem:[#allocation33_spill] sm:$0xff]  ;;  %v3137_v14 = vmov 0.0  }
 0x650   :  { %1523 = vmatpush1.msra.mxu0 %v2605_v15  ;;  %1594 = vmatpush1.msra.mxu1 %v2608_v16  ;;  %v3138_v15 = vld [vmem:[#allocation34_spill] sm:$0xff] }
 0x651   :  { %1524 = vmatprep.subr.mxu0 %v2611_v17  ;;  %1595 = vmatprep.subr.mxu1 %v2614_v18 }
 0x652   :  { %1525 = vmatpush1.msra.mxu0 %v2617_v19  ;;  %1596 = vmatpush1.msra.mxu1 %v2620_v20 }
 0x653   :  { %1526 = vmatprep.subr.mxu0 %v2623_v21  ;;  %1597 = vmatprep.subr.mxu1 %v2626_v23 }
 0x654   :  { %1527 = vmatpush1.msra.mxu0 %v2629_v26  ;;  %1598 = vmatpush1.msra.mxu1 %v2632_v27  ;;  %v1311_v27 = vld [vmem:[#allocation4 + $0x30] sm:$0xff] }
 0x655   :  { %1528 = vmatprep.subr.mxu0 %v2635_v28  ;;  %1599 = vmatprep.subr.mxu1 %v2638_v29 }
 0x656   :  { %1529 = vmatpush1.msra.mxu0 %v2641_v30  ;;  %1600 = vmatpush1.msra.mxu1 %v2644_v31 }
 0x657   :  { %1530 = vmatprep.subr.mxu0 %v2647_v32  ;;  %1601 = vmatprep.subr.mxu1 %v2650_v33 }
 0x658   :  { %1531 = vmatpush1.msra.mxu0 %v2653_v34  ;;  %1602 = vmatpush1.msra.mxu1 %v2656_v35 }
 0x659   :  { %1532 = vmatprep.subr.mxu0 %v2659_v36  ;;  %1603 = vmatprep.subr.mxu1 %v2662_v37 }
 0x65a   :  { %1533 = vmatpush1.msra.mxu0 %v2665_v38  ;;  %1604 = vmatpush1.msra.mxu1 %v2668_v39 }
 0x65b   :  { %1534 = vmatprep.subr.mxu0 %v3118_v2  ;;  %1605 = vmatprep.subr.mxu1 %v3119_v54 }
 0x65c   :  { %1535 = vmatpush1.msra.mxu0 %v3120_v52  ;;  %1606 = vmatpush1.msra.mxu1 %v3121_v1 }
 0x65d   :  { %1536 = vmatprep.subr.mxu0 %v3122_v51  ;;  %1607 = vmatprep.subr.mxu1 %v3123_v47 }
 0x65e   :  { %1537 = vmatpush1.msra.mxu0 %v3124_v61  ;;  %1608 = vmatpush1.msra.mxu1 %v3125_v59 }
 0x65f   :  { %1538 = vmatprep.subr.mxu0 %v3126_v3  ;;  %1609 = vmatprep.subr.mxu1 %v3127_v4 }
 0x660   :  { %1539 = vmatpush1.msra.mxu0 %v3128_v5  ;;  %1610 = vmatpush1.msra.mxu1 %v3129_v6 }
 0x661   :  { %1540 = vmatprep.subr.mxu0 %v3130_v7  ;;  %1611 = vmatprep.subr.mxu1 %v3131_v8 }
 0x662   :  { %1541 = vmatpush1.msra.mxu0 %v3132_v9  ;;  %1612 = vmatpush1.msra.mxu1 %v3133_v10 }
 0x663   :  { %1542 = vmatprep.subr.mxu0 %v3134_v11  ;;  %1613 = vmatprep.subr.mxu1 %v3135_v12 }
 0x664   :  { %1543 = vmatpush1.msra.mxu0 %v3136_v13  ;;  %1576 = vmatprep.mubr.f32.mxu0 %v3137_v14 }
 0x665   :  { %1614 = vmatpush1.msra.mxu1 %v3138_v15  ;;  %1647 = vmatprep.mubr.f32.mxu1 %v3137_v14 }
 0x705   :  { %v1378_v16 = vpop.f32.mrf.mxu0  ;;  %v1449_v17 = vpop.f32.mrf.mxu1 }
 0x707   :  { %v1380_v18 = vpop.f32.mrf.mxu0  ;;  %v1451_v19 = vpop.f32.mrf.mxu1 }
 0x708   :  { %v1458_v20 = vcombine.low %v1378_v16, %v1380_v18  ;;  %v1459_v21 = vcombine.low %v1449_v17, %v1451_v19 }
 0x70a   :  { %v1466_v23 = vrot.slane %v1458_v20, %v2318_v62  ;;  %v1473_v26 = vrot.slane %v1459_v21, %v2318_v62 }
 0x70c   :  { %v1474_v28 = vcombine.low %v1466_v23, %v1473_v26 }
 0x70e   :  { %v1476_v29 = vadd.f32 %v1474_v28, %v1311_v27 }
 0x710   :  { %v1748_v30 = vmul.f32 -1.442695, %v1476_v29  ;;  %v1484_v31 = vrot.slane %v1476_v29, 2  ;;  %v1495_v33 = vrot.slane %v1476_v29, 6  ;;  %v1492_v36 = vrot.slane %v1476_v29, 4 }
 0x712   :  { %1860 = vpow2.f32 %v1748_v30  ;;  %v1749_v32 = vmul.f32 -1.442695, %v1484_v31  ;;  %v1750_v34 = vmul.f32 -1.442695, %v1495_v33 }
 0x714   :  { %1862 = vpow2.f32 %v1749_v32 }
 0x715   :  { %1864 = vpow2.f32 %v1750_v34 }
 0x71f   :  { %v1861_v35 = vpop.eup %1860 }
 0x720   :  { %v1480_v37 = vadd.f32 1.0, %v1861_v35 }
 0x721   :  { %v1863_v38 = vpop.eup %1862 }
 0x722   :  { %1866 = vrcp.f32 %v1480_v37  ;;  %v1489_v39 = vadd.f32 1.0, %v1863_v38  ;;  %v1865_v22 = vpop.eup %1864 }
 0x723   :  { %1868 = vtanh.f32 %v1492_v36  ;;  %v1500_v24 = vadd.f32 1.0, %v1865_v22 }
 0x724   :  { %1870 = vrcp.f32 %v1489_v39 }
 0x725   :  { %1872 = vrcp.f32 %v1500_v24 }
 0x72f   :  { %v1867_v55 = vpop.eup %1866 }
 0x730   :  { %v1869_v40 = vpop.eup %1868 }
 0x731   :  { %v1871_v41 = vpop.eup %1870  ;;  %v1504_v25 = vmul.f32 %v1869_v40, %v1867_v55 }
 0x732   :  { %v1503_v43 = vmul.f32 %v1871_v41, %v2810_v50  ;;  %v1873_v46 = vpop.eup %1872 }
 0x734   :  { %v1505_v57 = vadd.f32 %v1504_v25, %v1503_v43 }
 0x736   :  { %1874 = vtanh.f32 %v1505_v57 }
 0x743   :  { %v1875_v58 = vpop.eup %1874 }
 0x744   :  { %v1507_v60 = vmul.f32 %v1875_v58, %v1873_v46 }
 0x746   :  { %1509 = vst [vmem:[#allocation9 + $0xc] sm:$0x3] %v1507_v60  ;;  %1577 = vmatmul.mubr.f32.vlgmr.msra.gmra.mxu0 %v1507_v60  ;;  %1648 = vmatmul.mubr.f32.vlgmr.msra.gmra.mxu1 %v1507_v60 }
 0x806   :  { %v1578_v45 = vpop.f32.mrf.mxu0  ;;  %v1649_v63 = vpop.f32.mrf.mxu1 }
 0x808   :  { %v1580_v48 = vpop.f32.mrf.mxu0  ;;  %v1651_v56 = vpop.f32.mrf.mxu1 }
 0x809   :  { %v1658_v0 = vcombine.low %v1578_v45, %v1580_v48  ;;  %v1659_v49 = vcombine.low %v1649_v63, %v1651_v56 }
 0x80b   :  { %v1666_v42 = vrot.slane %v1658_v0, %v2318_v62  ;;  %v1673_v50 = vrot.slane %v1659_v49, %v2318_v62 }
 0x80d   :  { %v1674_v44 = vcombine.low %v1666_v42, %v1673_v50 }
 0x80f   :  { %v1676_v2 = vadd.f32 %v1674_v44, %v1511_v53 }
 0x811   :  { %v1751_v54 = vmul.f32 -1.442695, %v1676_v2  ;;  %v1684_v52 = vrot.slane %v1676_v2, 2  ;;  %v1695_v51 = vrot.slane %v1676_v2, 6  ;;  %v1692_v59 = vrot.slane %v1676_v2, 4 }
 0x813   :  { %1876 = vpow2.f32 %v1751_v54  ;;  %v1752_v1 = vmul.f32 -1.442695, %v1684_v52  ;;  %v1753_v47 = vmul.f32 -1.442695, %v1695_v51 }
 0x815   :  { %1878 = vpow2.f32 %v1752_v1 }
 0x816   :  { %1880 = vpow2.f32 %v1753_v47 }
 0x820   :  { %v1877_v61 = vpop.eup %1876 }
 0x821   :  { %v1680_v3 = vadd.f32 1.0, %v1877_v61 }
 0x822   :  { %v1879_v4 = vpop.eup %1878 }
 0x823   :  { %1882 = vrcp.f32 %v1680_v3  ;;  %v1689_v5 = vadd.f32 1.0, %v1879_v4  ;;  %v1881_v62 = vpop.eup %1880 }
 0x824   :  { %1884 = vtanh.f32 %v1692_v59  ;;  %v1700_v9 = vadd.f32 1.0, %v1881_v62 }
 0x825   :  { %1886 = vrcp.f32 %v1689_v5 }
 0x826   :  { %1888 = vrcp.f32 %v1700_v9 }
 0x830   :  { %v1883_v6 = vpop.eup %1882 }
 0x831   :  { %v1885_v7 = vpop.eup %1884 }
 0x832   :  { %v1887_v8 = vpop.eup %1886  ;;  %v1704_v11 = vmul.f32 %v1885_v7, %v1883_v6 }
 0x833   :  { %v1703_v10 = vmul.f32 %v1887_v8, %v1505_v57  ;;  %v1889_v13 = vpop.eup %1888 }
 0x835   :  { %v1705_v12 = vadd.f32 %v1704_v11, %v1703_v10 }
 0x837   :  { %1890 = vtanh.f32 %v1705_v12  ;;  %1711 = vst [vmem:[#allocation3] sm:$0x3] %v1705_v12 }
 0x844   :  { %v1891_v14 = vpop.eup %1890 }
 0x845   :  { %v1707_v15 = vmul.f32 %v1891_v14, %v1889_v13 }
 0x847   :  { %1709 = vst [vmem:[#allocation9 + $0xe] sm:$0x3] %v1707_v15  ;;  %1710 = vst [vmem:[#allocation2] sm:$0x3] %v1707_v15 }
 0x848   :  { %2007 = shalt.err (!%p2004_p0)
}
 0x849   :  { %s2031_s24 = smov 2  }
 0x84a   :  { %1723 = dma.vmem_to_hbm [thread:$0]  %s1718_s1, 256, %s2889_s2, [#allocation6], %s2027_s20, %s2027_s20, %s2031_s24  }
 0x84b   :  { %2020 = dma.done.wait [#allocation6], 256  }
 0x84c   :  { %2021 = vsyncadd [#allocation6], 4294967040 }
 0x84d   :  { %1727 = vsyncpa [#allocation5], 1 }
 0x84e   :  { %1728 = vsyncpa [#allocation8], 1 }
 0x84f   :  { %1729 = vsyncpa [#allocation6], 1 }

</bundles_post_ra>
